<compile_context>
chip_gen: v7x
topology: tpu7x:2x2x1
jax: 0.10.0
libtpu: 0.0.40
codegen_flags: <defaults>
</compile_context>

<pallas_src>
import functools

import numpy as np

import jax
import jax.numpy as jnp
from jax.experimental import pallas as pl
from jax.experimental.pallas import tpu as pltpu


# --------------------------------------------------------------------------
# Fused forward kernel: 2 LSTM layers (unrolled over time) + both heads.
# Gate order matches PyTorch nn.LSTM: i, f, g, o (stacked along the 4H dim).
# --------------------------------------------------------------------------
def _lstm_a2c_kernel(env_ref, act_ref,
                     wih0_ref, whh0_ref, b0_ref,
                     wih1_ref, whh1_ref, b1_ref,
                     mw1_ref, mb1_ref, mw2_ref, mb2_ref,
                     mw3_ref, mb3_ref, mw4_ref, mb4_ref,
                     qw1_ref, qb1_ref, qw2_ref, qb2_ref, qw3_ref, qb3_ref,
                     mu_ref, q_ref):
    B, T, _ = env_ref.shape
    H = whh0_ref.shape[0]
    O = mw4_ref.shape[1]

    x_all = env_ref[...].astype(jnp.float32)     # (B, T, F)  ~1 KB, stays in vregs
    act = act_ref[...].astype(jnp.float32)       # (B, O)

    wih0 = wih0_ref[...]
    whh0 = whh0_ref[...]
    b0 = b0_ref[...]
    wih1 = wih1_ref[...]
    whh1 = whh1_ref[...]
    b1 = b1_ref[...]

    def lstm_cell(x, h, c, wih, whh, b):
        # Fused gates: one lane-dense (B, 4H) pre-activation per layer per step.
        g = (jnp.dot(x, wih, preferred_element_type=jnp.float32)
             + jnp.dot(h, whh, preferred_element_type=jnp.float32)
             + b)
        i_g = jax.nn.sigmoid(g[:, 0 * H:1 * H])
        f_g = jax.nn.sigmoid(g[:, 1 * H:2 * H])
        g_g = jnp.tanh(g[:, 2 * H:3 * H])
        o_g = jax.nn.sigmoid(g[:, 3 * H:4 * H])
        c_new = f_g * c + i_g * g_g
        h_new = o_g * jnp.tanh(c_new)
        return h_new, c_new

    zeros = jnp.zeros((B, H), jnp.float32)
    h0, c0, h1, c1 = zeros, zeros, zeros, zeros

    # T is static and small: fully-unrolled time loop with concrete indices
    # (equivalent to lax.fori_loop(..., unroll=True), all slicing static).
    for t in range(T):
        x_t = x_all[:, t, :]                     # (B, F)  static sublane slice
        h0, c0 = lstm_cell(x_t, h0, c0, wih0, whh0, b0)
        h1, c1 = lstm_cell(h0, h1, c1, wih1, whh1, b1)

    def lrelu(x):
        return jnp.maximum(x, 0.01 * x)          # F.leaky_relu default slope

    # ---- actor head: Linear(cat([h_last, act_state])) as partial matmuls ----
    m = lrelu(jnp.dot(h1, mw1_ref[:H, :], preferred_element_type=jnp.float32)
              + jnp.dot(act, mw1_ref[H:, :], preferred_element_type=jnp.float32)
              + mb1_ref[...])
    m = lrelu(jnp.dot(m, mw2_ref[...], preferred_element_type=jnp.float32)
              + mb2_ref[...])
    m = lrelu(jnp.dot(m, mw3_ref[...], preferred_element_type=jnp.float32)
              + mb3_ref[...])
    logits = (jnp.dot(m, mw4_ref[...], preferred_element_type=jnp.float32)
              + mb4_ref[...])
    e = jnp.exp(logits - jnp.max(logits, axis=-1, keepdims=True))
    mu = e * pl.reciprocal(jnp.sum(e, axis=-1, keepdims=True), approx=True)
    mu_ref[...] = mu.astype(mu_ref.dtype)

    # ---- critic head: Linear(cat([h_last, act_state, action(width 0), mu])) ----
    q = lrelu(jnp.dot(h1, qw1_ref[:H, :], preferred_element_type=jnp.float32)
              + jnp.dot(act, qw1_ref[H:H + O, :], preferred_element_type=jnp.float32)
              + jnp.dot(mu, qw1_ref[H + O:, :], preferred_element_type=jnp.float32)
              + qb1_ref[...])
    q = lrelu(jnp.dot(q, qw2_ref[...], preferred_element_type=jnp.float32)
              + qb2_ref[...])
    q_ref[...] = (jnp.dot(q, qw3_ref[...], preferred_element_type=jnp.float32)
                  + qb3_ref[...]).astype(q_ref.dtype)


# --------------------------------------------------------------------------
# Full forward pass (matches LSTM_A2C.forward), one pallas_call total.
# --------------------------------------------------------------------------
@functools.partial(jax.jit)
def lstm_a2c_forward(params, env_state, act_state, action):
    if action.shape[1] != 0:
        # See NOTE at top: the reference layer widths only compose for A == 0.
        raise ValueError("`action` must have zero feature width (got "
                         f"{action.shape[1]}); see module NOTE.")
    B = env_state.shape[0]
    O = params["mu"]["w4"].shape[-1]
    l0, l1 = params["lstm0"], params["lstm1"]
    mp, qp = params["mu"], params["q"]

    mu, q = pl.pallas_call(
        _lstm_a2c_kernel,
        out_shape=(jax.ShapeDtypeStruct((B, O), jnp.float32),
                   jax.ShapeDtypeStruct((B, 1), jnp.float32)),
    )(env_state.astype(jnp.float32), act_state.astype(jnp.float32),
      l0["wih"], l0["whh"], l0["b"],
      l1["wih"], l1["whh"], l1["b"],
      mp["w1"], mp["b1"], mp["w2"], mp["b2"],
      mp["w3"], mp["b3"], mp["w4"], mp["b4"],
      qp["w1"], qp["b1"], qp["w2"], qp["b2"], qp["w3"], qp["b3"])
    return mu, q


# --------------------------------------------------------------------------
# Parameter construction (deterministic, PyTorch-like uniform(-1/sqrt(fan), +))
# Fused LSTM weight layout: wih [IN, 4H], whh [H, 4H], b [1, 4H] (b_ih + b_hh).
# --------------------------------------------------------------------------
def _uniform(key, shape, bound):
    return jax.random.uniform(key, shape, jnp.float32, -bound, bound)


def init_params(key, input_size, hidden_size, output_size):
    keys = iter(jax.random.split(key, 32))
    H, O = hidden_size, output_size
    kb = 1.0 / float(H) ** 0.5

    def lstm_p(in_dim):
        return dict(
            wih=_uniform(next(keys), (in_dim, 4 * H), kb),   # gates i|f|g|o
            whh=_uniform(next(keys), (H, 4 * H), kb),
            b=(_uniform(next(keys), (1, 4 * H), kb)
               + _uniform(next(keys), (1, 4 * H), kb)),      # b_ih + b_hh
        )

    def linear(i, o):
        bd = 1.0 / float(i) ** 0.5
        return (_uniform(next(keys), (i, o), bd),
                _uniform(next(keys), (1, o), bd))

    params = dict(lstm0=lstm_p(input_size), lstm1=lstm_p(H))
    mu = {}
    mu["w1"], mu["b1"] = linear(H + O, 64)
    mu["w2"], mu["b2"] = linear(64, 32)
    mu["w3"], mu["b3"] = linear(32, 16)
    mu["w4"], mu["b4"] = linear(16, O)
    params["mu"] = mu
    q = {}
    q["w1"], q["b1"] = linear(H + 2 * O, 64)
    q["w2"], q["b2"] = linear(64, 8)
    q["w3"], q["b3"] = linear(8, 1)
    params["q"] = q
    return params


# --------------------------------------------------------------------------
# Pure numpy reference (float64 internals) for correctness checking.
# --------------------------------------------------------------------------
def _reference_forward_np(params, env_state, act_state):
    p = jax.tree_util.tree_map(lambda a: np.asarray(a, np.float64), params)
    x = np.asarray(env_state, np.float64)
    a = np.asarray(act_state, np.float64)
    B, T, _ = x.shape
    H = p["lstm0"]["whh"].shape[0]

    def sig(z):
        return 1.0 / (1.0 + np.exp(-z))

    def cell(xt, h, c, lp):
        g = xt @ lp["wih"] + h @ lp["whh"] + lp["b"]
        i, f = sig(g[:, :H]), sig(g[:, H:2 * H])
        gg, o = np.tanh(g[:, 2 * H:3 * H]), sig(g[:, 3 * H:])
        c = f * c + i * gg
        return o * np.tanh(c), c

    h0 = c0 = h1 = c1 = np.zeros((B, H))
    for t in range(T):
        h0, c0 = cell(x[:, t, :], h0, c0, p["lstm0"])
        h1, c1 = cell(h0, h1, c1, p["lstm1"])

    cat1 = np.concatenate([h1, a], axis=1)
    lrelu = lambda z: np.where(z > 0, z, 0.01 * z)
    mp, qp = p["mu"], p["q"]
    m = lrelu(cat1 @ mp["w1"] + mp["b1"])
    m = lrelu(m @ mp["w2"] + mp["b2"])
    m = lrelu(m @ mp["w3"] + mp["b3"])
    logits = m @ mp["w4"] + mp["b4"]
    e = np.exp(logits - logits.max(axis=1, keepdims=True))
    mu = e / e.sum(axis=1, keepdims=True)
    cat2 = np.concatenate([cat1, mu], axis=1)   # zero-width action omitted
    qv = lrelu(cat2 @ qp["w1"] + qp["b1"])
    qv = lrelu(qv @ qp["w2"] + qp["b2"])
    qv = qv @ qp["w3"] + qp["b3"]
    return mu, qv


if __name__ == "__main__":
    B, T = 2, 8
    INPUT_SIZE, HIDDEN_SIZE, OUTPUT_SIZE = 16, 32, 4

    key = jax.random.PRNGKey(0)
    k_p, k_env, k_act = jax.random.split(key, 3)

    params = init_params(k_p, INPUT_SIZE, HIDDEN_SIZE, OUTPUT_SIZE)

    env_state = jax.random.normal(k_env, (B, T, INPUT_SIZE), jnp.float32)
    act_state = jax.random.normal(k_act, (B, OUTPUT_SIZE), jnp.float32)
    action = jnp.zeros((B, 0), jnp.float32)   # zero-width (see NOTE above)

    mu, q = lstm_a2c_forward(params, env_state, act_state, action)
    jax.block_until_ready((mu, q))

    assert mu.shape == (B, OUTPUT_SIZE) and q.shape == (B, 1)
    assert bool(jnp.all(jnp.isfinite(mu))) and bool(jnp.all(jnp.isfinite(q)))
    # approx EUP reciprocal in the softmax => rows sum to 1 within ~2^-12
    assert bool(jnp.allclose(jnp.sum(mu, axis=1), 1.0, atol=1e-3))

    mu_ref, q_ref = _reference_forward_np(params, env_state, act_state)
    assert np.allclose(np.asarray(mu), mu_ref, atol=2e-3, rtol=2e-3)
    assert np.allclose(np.asarray(q), q_ref, atol=2e-3, rtol=2e-3)
    print("KERNEL_OK")
</pallas_src>

<mosaic_0001>
module attributes {stable_mosaic.version = 11 : i64} {
  func.func @_lstm_a2c_kernel(%arg0: memref<2x8x16xf32, #tpu.memory_space<vmem>>, %arg1: memref<2x4xf32, #tpu.memory_space<vmem>>, %arg2: memref<16x128xf32, #tpu.memory_space<vmem>>, %arg3: memref<32x128xf32, #tpu.memory_space<vmem>>, %arg4: memref<1x128xf32, #tpu.memory_space<vmem>>, %arg5: memref<32x128xf32, #tpu.memory_space<vmem>>, %arg6: memref<32x128xf32, #tpu.memory_space<vmem>>, %arg7: memref<1x128xf32, #tpu.memory_space<vmem>>, %arg8: memref<36x64xf32, #tpu.memory_space<vmem>>, %arg9: memref<1x64xf32, #tpu.memory_space<vmem>>, %arg10: memref<64x32xf32, #tpu.memory_space<vmem>>, %arg11: memref<1x32xf32, #tpu.memory_space<vmem>>, %arg12: memref<32x16xf32, #tpu.memory_space<vmem>>, %arg13: memref<1x16xf32, #tpu.memory_space<vmem>>, %arg14: memref<16x4xf32, #tpu.memory_space<vmem>>, %arg15: memref<1x4xf32, #tpu.memory_space<vmem>>, %arg16: memref<40x64xf32, #tpu.memory_space<vmem>>, %arg17: memref<1x64xf32, #tpu.memory_space<vmem>>, %arg18: memref<64x8xf32, #tpu.memory_space<vmem>>, %arg19: memref<1x8xf32, #tpu.memory_space<vmem>>, %arg20: memref<8x1xf32, #tpu.memory_space<vmem>>, %arg21: memref<1x1xf32, #tpu.memory_space<vmem>>, %arg22: memref<2x4xf32, #tpu.memory_space<vmem>>, %arg23: memref<2x1xf32, #tpu.memory_space<vmem>>) attributes {dimension_semantics = [], scalar_prefetch = 0 : i64, scratch_operands = 0 : i64, tpu.core_type = #tpu.core_type<tc>} {
    %c0 = arith.constant 0 : index
    %c0_0 = arith.constant 0 : index
    %c0_1 = arith.constant 0 : index
    %0 = vector.load %arg0[%c0, %c0_0, %c0_1] : memref<2x8x16xf32, #tpu.memory_space<vmem>>, vector<2x8x16xf32>
    %c0_2 = arith.constant 0 : index
    %c0_3 = arith.constant 0 : index
    %1 = vector.load %arg1[%c0_2, %c0_3] : memref<2x4xf32, #tpu.memory_space<vmem>>, vector<2x4xf32>
    %c0_4 = arith.constant 0 : index
    %c0_5 = arith.constant 0 : index
    %2 = vector.load %arg2[%c0_4, %c0_5] : memref<16x128xf32, #tpu.memory_space<vmem>>, vector<16x128xf32>
    %c0_6 = arith.constant 0 : index
    %c0_7 = arith.constant 0 : index
    %3 = vector.load %arg3[%c0_6, %c0_7] : memref<32x128xf32, #tpu.memory_space<vmem>>, vector<32x128xf32>
    %c0_8 = arith.constant 0 : index
    %c0_9 = arith.constant 0 : index
    %4 = vector.load %arg4[%c0_8, %c0_9] : memref<1x128xf32, #tpu.memory_space<vmem>>, vector<1x128xf32>
    %c0_10 = arith.constant 0 : index
    %c0_11 = arith.constant 0 : index
    %5 = vector.load %arg5[%c0_10, %c0_11] : memref<32x128xf32, #tpu.memory_space<vmem>>, vector<32x128xf32>
    %c0_12 = arith.constant 0 : index
    %c0_13 = arith.constant 0 : index
    %6 = vector.load %arg6[%c0_12, %c0_13] : memref<32x128xf32, #tpu.memory_space<vmem>>, vector<32x128xf32>
    %c0_14 = arith.constant 0 : index
    %c0_15 = arith.constant 0 : index
    %7 = vector.load %arg7[%c0_14, %c0_15] : memref<1x128xf32, #tpu.memory_space<vmem>>, vector<1x128xf32>
    %cst = arith.constant 0.000000e+00 : f32
    %8 = vector.broadcast %cst : f32 to vector<2x32xf32>
    %9 = vector.extract_strided_slice %0 {offsets = [0, 0, 0], sizes = [2, 1, 16], strides = [1, 1, 1]} : vector<2x8x16xf32> to vector<2x1x16xf32>
    %10 = vector.shape_cast %9 : vector<2x1x16xf32> to vector<2x16xf32>
    %cst_16 = arith.constant dense<0.000000e+00> : vector<2x128xf32>
    %11 = tpu.matmul %10, %2, %cst_16 {dimension_numbers = #tpu.dot_dimension_numbers<[1], [0], [0], [1], [0, 0, 1, 1], [], []>} : vector<2x16xf32>, vector<16x128xf32>, vector<2x128xf32> -> vector<2x128xf32>
    %cst_17 = arith.constant dense<0.000000e+00> : vector<2x128xf32>
    %12 = tpu.matmul %8, %3, %cst_17 {dimension_numbers = #tpu.dot_dimension_numbers<[1], [0], [0], [1], [0, 0, 1, 1], [], []>} : vector<2x32xf32>, vector<32x128xf32>, vector<2x128xf32> -> vector<2x128xf32>
    %13 = arith.addf %11, %12 : vector<2x128xf32>
    %14 = vector.broadcast %4 : vector<1x128xf32> to vector<2x128xf32>
    %15 = arith.addf %13, %14 : vector<2x128xf32>
    %16 = vector.extract_strided_slice %15 {offsets = [0, 0], sizes = [2, 32], strides = [1, 1]} : vector<2x128xf32> to vector<2x32xf32>
    %17 = arith.negf %16 : vector<2x32xf32>
    %18 = math.exp %17 : vector<2x32xf32>
    %cst_18 = arith.constant 1.000000e+00 : f32
    %19 = vector.broadcast %cst_18 : f32 to vector<2x32xf32>
    %20 = arith.addf %19, %18 : vector<2x32xf32>
    %21 = arith.divf %19, %20 : vector<2x32xf32>
    %22 = vector.extract_strided_slice %15 {offsets = [0, 32], sizes = [2, 32], strides = [1, 1]} : vector<2x128xf32> to vector<2x32xf32>
    %23 = arith.negf %22 : vector<2x32xf32>
    %24 = math.exp %23 : vector<2x32xf32>
    %cst_19 = arith.constant 1.000000e+00 : f32
    %25 = vector.broadcast %cst_19 : f32 to vector<2x32xf32>
    %26 = arith.addf %25, %24 : vector<2x32xf32>
    %27 = arith.divf %25, %26 : vector<2x32xf32>
    %28 = vector.extract_strided_slice %15 {offsets = [0, 64], sizes = [2, 32], strides = [1, 1]} : vector<2x128xf32> to vector<2x32xf32>
    %29 = math.tanh %28 : vector<2x32xf32>
    %30 = vector.extract_strided_slice %15 {offsets = [0, 96], sizes = [2, 32], strides = [1, 1]} : vector<2x128xf32> to vector<2x32xf32>
    %31 = arith.negf %30 : vector<2x32xf32>
    %32 = math.exp %31 : vector<2x32xf32>
    %cst_20 = arith.constant 1.000000e+00 : f32
    %33 = vector.broadcast %cst_20 : f32 to vector<2x32xf32>
    %34 = arith.addf %33, %32 : vector<2x32xf32>
    %35 = arith.divf %33, %34 : vector<2x32xf32>
    %36 = arith.mulf %27, %8 : vector<2x32xf32>
    %37 = arith.mulf %21, %29 : vector<2x32xf32>
    %38 = arith.addf %36, %37 : vector<2x32xf32>
    %39 = math.tanh %38 : vector<2x32xf32>
    %40 = arith.mulf %35, %39 : vector<2x32xf32>
    %cst_21 = arith.constant dense<0.000000e+00> : vector<2x128xf32>
    %41 = tpu.matmul %40, %5, %cst_21 {dimension_numbers = #tpu.dot_dimension_numbers<[1], [0], [0], [1], [0, 0, 1, 1], [], []>} : vector<2x32xf32>, vector<32x128xf32>, vector<2x128xf32> -> vector<2x128xf32>
    %cst_22 = arith.constant dense<0.000000e+00> : vector<2x128xf32>
    %42 = tpu.matmul %8, %6, %cst_22 {dimension_numbers = #tpu.dot_dimension_numbers<[1], [0], [0], [1], [0, 0, 1, 1], [], []>} : vector<2x32xf32>, vector<32x128xf32>, vector<2x128xf32> -> vector<2x128xf32>
    %43 = arith.addf %41, %42 : vector<2x128xf32>
    %44 = vector.broadcast %7 : vector<1x128xf32> to vector<2x128xf32>
    %45 = arith.addf %43, %44 : vector<2x128xf32>
    %46 = vector.extract_strided_slice %45 {offsets = [0, 0], sizes = [2, 32], strides = [1, 1]} : vector<2x128xf32> to vector<2x32xf32>
    %47 = arith.negf %46 : vector<2x32xf32>
    %48 = math.exp %47 : vector<2x32xf32>
    %cst_23 = arith.constant 1.000000e+00 : f32
    %49 = vector.broadcast %cst_23 : f32 to vector<2x32xf32>
    %50 = arith.addf %49, %48 : vector<2x32xf32>
    %51 = arith.divf %49, %50 : vector<2x32xf32>
    %52 = vector.extract_strided_slice %45 {offsets = [0, 32], sizes = [2, 32], strides = [1, 1]} : vector<2x128xf32> to vector<2x32xf32>
    %53 = arith.negf %52 : vector<2x32xf32>
    %54 = math.exp %53 : vector<2x32xf32>
    %cst_24 = arith.constant 1.000000e+00 : f32
    %55 = vector.broadcast %cst_24 : f32 to vector<2x32xf32>
    %56 = arith.addf %55, %54 : vector<2x32xf32>
    %57 = arith.divf %55, %56 : vector<2x32xf32>
    %58 = vector.extract_strided_slice %45 {offsets = [0, 64], sizes = [2, 32], strides = [1, 1]} : vector<2x128xf32> to vector<2x32xf32>
    %59 = math.tanh %58 : vector<2x32xf32>
    %60 = vector.extract_strided_slice %45 {offsets = [0, 96], sizes = [2, 32], strides = [1, 1]} : vector<2x128xf32> to vector<2x32xf32>
    %61 = arith.negf %60 : vector<2x32xf32>
    %62 = math.exp %61 : vector<2x32xf32>
    %cst_25 = arith.constant 1.000000e+00 : f32
    %63 = vector.broadcast %cst_25 : f32 to vector<2x32xf32>
    %64 = arith.addf %63, %62 : vector<2x32xf32>
    %65 = arith.divf %63, %64 : vector<2x32xf32>
    %66 = arith.mulf %57, %8 : vector<2x32xf32>
    %67 = arith.mulf %51, %59 : vector<2x32xf32>
    %68 = arith.addf %66, %67 : vector<2x32xf32>
    %69 = math.tanh %68 : vector<2x32xf32>
    %70 = arith.mulf %65, %69 : vector<2x32xf32>
    %71 = vector.extract_strided_slice %0 {offsets = [0, 1, 0], sizes = [2, 1, 16], strides = [1, 1, 1]} : vector<2x8x16xf32> to vector<2x1x16xf32>
    %72 = vector.shape_cast %71 : vector<2x1x16xf32> to vector<2x16xf32>
    %cst_26 = arith.constant dense<0.000000e+00> : vector<2x128xf32>
    %73 = tpu.matmul %72, %2, %cst_26 {dimension_numbers = #tpu.dot_dimension_numbers<[1], [0], [0], [1], [0, 0, 1, 1], [], []>} : vector<2x16xf32>, vector<16x128xf32>, vector<2x128xf32> -> vector<2x128xf32>
    %cst_27 = arith.constant dense<0.000000e+00> : vector<2x128xf32>
    %74 = tpu.matmul %40, %3, %cst_27 {dimension_numbers = #tpu.dot_dimension_numbers<[1], [0], [0], [1], [0, 0, 1, 1], [], []>} : vector<2x32xf32>, vector<32x128xf32>, vector<2x128xf32> -> vector<2x128xf32>
    %75 = arith.addf %73, %74 : vector<2x128xf32>
    %76 = vector.broadcast %4 : vector<1x128xf32> to vector<2x128xf32>
    %77 = arith.addf %75, %76 : vector<2x128xf32>
    %78 = vector.extract_strided_slice %77 {offsets = [0, 0], sizes = [2, 32], strides = [1, 1]} : vector<2x128xf32> to vector<2x32xf32>
    %79 = arith.negf %78 : vector<2x32xf32>
    %80 = math.exp %79 : vector<2x32xf32>
    %cst_28 = arith.constant 1.000000e+00 : f32
    %81 = vector.broadcast %cst_28 : f32 to vector<2x32xf32>
    %82 = arith.addf %81, %80 : vector<2x32xf32>
    %83 = arith.divf %81, %82 : vector<2x32xf32>
    %84 = vector.extract_strided_slice %77 {offsets = [0, 32], sizes = [2, 32], strides = [1, 1]} : vector<2x128xf32> to vector<2x32xf32>
    %85 = arith.negf %84 : vector<2x32xf32>
    %86 = math.exp %85 : vector<2x32xf32>
    %cst_29 = arith.constant 1.000000e+00 : f32
    %87 = vector.broadcast %cst_29 : f32 to vector<2x32xf32>
    %88 = arith.addf %87, %86 : vector<2x32xf32>
    %89 = arith.divf %87, %88 : vector<2x32xf32>
    %90 = vector.extract_strided_slice %77 {offsets = [0, 64], sizes = [2, 32], strides = [1, 1]} : vector<2x128xf32> to vector<2x32xf32>
    %91 = math.tanh %90 : vector<2x32xf32>
    %92 = vector.extract_strided_slice %77 {offsets = [0, 96], sizes = [2, 32], strides = [1, 1]} : vector<2x128xf32> to vector<2x32xf32>
    %93 = arith.negf %92 : vector<2x32xf32>
    %94 = math.exp %93 : vector<2x32xf32>
    %cst_30 = arith.constant 1.000000e+00 : f32
    %95 = vector.broadcast %cst_30 : f32 to vector<2x32xf32>
    %96 = arith.addf %95, %94 : vector<2x32xf32>
    %97 = arith.divf %95, %96 : vector<2x32xf32>
    %98 = arith.mulf %89, %38 : vector<2x32xf32>
    %99 = arith.mulf %83, %91 : vector<2x32xf32>
    %100 = arith.addf %98, %99 : vector<2x32xf32>
    %101 = math.tanh %100 : vector<2x32xf32>
    %102 = arith.mulf %97, %101 : vector<2x32xf32>
    %cst_31 = arith.constant dense<0.000000e+00> : vector<2x128xf32>
    %103 = tpu.matmul %102, %5, %cst_31 {dimension_numbers = #tpu.dot_dimension_numbers<[1], [0], [0], [1], [0, 0, 1, 1], [], []>} : vector<2x32xf32>, vector<32x128xf32>, vector<2x128xf32> -> vector<2x128xf32>
    %cst_32 = arith.constant dense<0.000000e+00> : vector<2x128xf32>
    %104 = tpu.matmul %70, %6, %cst_32 {dimension_numbers = #tpu.dot_dimension_numbers<[1], [0], [0], [1], [0, 0, 1, 1], [], []>} : vector<2x32xf32>, vector<32x128xf32>, vector<2x128xf32> -> vector<2x128xf32>
    %105 = arith.addf %103, %104 : vector<2x128xf32>
    %106 = vector.broadcast %7 : vector<1x128xf32> to vector<2x128xf32>
    %107 = arith.addf %105, %106 : vector<2x128xf32>
    %108 = vector.extract_strided_slice %107 {offsets = [0, 0], sizes = [2, 32], strides = [1, 1]} : vector<2x128xf32> to vector<2x32xf32>
    %109 = arith.negf %108 : vector<2x32xf32>
    %110 = math.exp %109 : vector<2x32xf32>
    %cst_33 = arith.constant 1.000000e+00 : f32
    %111 = vector.broadcast %cst_33 : f32 to vector<2x32xf32>
    %112 = arith.addf %111, %110 : vector<2x32xf32>
    %113 = arith.divf %111, %112 : vector<2x32xf32>
    %114 = vector.extract_strided_slice %107 {offsets = [0, 32], sizes = [2, 32], strides = [1, 1]} : vector<2x128xf32> to vector<2x32xf32>
    %115 = arith.negf %114 : vector<2x32xf32>
    %116 = math.exp %115 : vector<2x32xf32>
    %cst_34 = arith.constant 1.000000e+00 : f32
    %117 = vector.broadcast %cst_34 : f32 to vector<2x32xf32>
    %118 = arith.addf %117, %116 : vector<2x32xf32>
    %119 = arith.divf %117, %118 : vector<2x32xf32>
    %120 = vector.extract_strided_slice %107 {offsets = [0, 64], sizes = [2, 32], strides = [1, 1]} : vector<2x128xf32> to vector<2x32xf32>
    %121 = math.tanh %120 : vector<2x32xf32>
    %122 = vector.extract_strided_slice %107 {offsets = [0, 96], sizes = [2, 32], strides = [1, 1]} : vector<2x128xf32> to vector<2x32xf32>
    %123 = arith.negf %122 : vector<2x32xf32>
    %124 = math.exp %123 : vector<2x32xf32>
    %cst_35 = arith.constant 1.000000e+00 : f32
    %125 = vector.broadcast %cst_35 : f32 to vector<2x32xf32>
    %126 = arith.addf %125, %124 : vector<2x32xf32>
    %127 = arith.divf %125, %126 : vector<2x32xf32>
    %128 = arith.mulf %119, %68 : vector<2x32xf32>
    %129 = arith.mulf %113, %121 : vector<2x32xf32>
    %130 = arith.addf %128, %129 : vector<2x32xf32>
    %131 = math.tanh %130 : vector<2x32xf32>
    %132 = arith.mulf %127, %131 : vector<2x32xf32>
    %133 = vector.extract_strided_slice %0 {offsets = [0, 2, 0], sizes = [2, 1, 16], strides = [1, 1, 1]} : vector<2x8x16xf32> to vector<2x1x16xf32>
    %134 = vector.shape_cast %133 : vector<2x1x16xf32> to vector<2x16xf32>
    %cst_36 = arith.constant dense<0.000000e+00> : vector<2x128xf32>
    %135 = tpu.matmul %134, %2, %cst_36 {dimension_numbers = #tpu.dot_dimension_numbers<[1], [0], [0], [1], [0, 0, 1, 1], [], []>} : vector<2x16xf32>, vector<16x128xf32>, vector<2x128xf32> -> vector<2x128xf32>
    %cst_37 = arith.constant dense<0.000000e+00> : vector<2x128xf32>
    %136 = tpu.matmul %102, %3, %cst_37 {dimension_numbers = #tpu.dot_dimension_numbers<[1], [0], [0], [1], [0, 0, 1, 1], [], []>} : vector<2x32xf32>, vector<32x128xf32>, vector<2x128xf32> -> vector<2x128xf32>
    %137 = arith.addf %135, %136 : vector<2x128xf32>
    %138 = vector.broadcast %4 : vector<1x128xf32> to vector<2x128xf32>
    %139 = arith.addf %137, %138 : vector<2x128xf32>
    %140 = vector.extract_strided_slice %139 {offsets = [0, 0], sizes = [2, 32], strides = [1, 1]} : vector<2x128xf32> to vector<2x32xf32>
    %141 = arith.negf %140 : vector<2x32xf32>
    %142 = math.exp %141 : vector<2x32xf32>
    %cst_38 = arith.constant 1.000000e+00 : f32
    %143 = vector.broadcast %cst_38 : f32 to vector<2x32xf32>
    %144 = arith.addf %143, %142 : vector<2x32xf32>
    %145 = arith.divf %143, %144 : vector<2x32xf32>
    %146 = vector.extract_strided_slice %139 {offsets = [0, 32], sizes = [2, 32], strides = [1, 1]} : vector<2x128xf32> to vector<2x32xf32>
    %147 = arith.negf %146 : vector<2x32xf32>
    %148 = math.exp %147 : vector<2x32xf32>
    %cst_39 = arith.constant 1.000000e+00 : f32
    %149 = vector.broadcast %cst_39 : f32 to vector<2x32xf32>
    %150 = arith.addf %149, %148 : vector<2x32xf32>
    %151 = arith.divf %149, %150 : vector<2x32xf32>
    %152 = vector.extract_strided_slice %139 {offsets = [0, 64], sizes = [2, 32], strides = [1, 1]} : vector<2x128xf32> to vector<2x32xf32>
    %153 = math.tanh %152 : vector<2x32xf32>
    %154 = vector.extract_strided_slice %139 {offsets = [0, 96], sizes = [2, 32], strides = [1, 1]} : vector<2x128xf32> to vector<2x32xf32>
    %155 = arith.negf %154 : vector<2x32xf32>
    %156 = math.exp %155 : vector<2x32xf32>
    %cst_40 = arith.constant 1.000000e+00 : f32
    %157 = vector.broadcast %cst_40 : f32 to vector<2x32xf32>
    %158 = arith.addf %157, %156 : vector<2x32xf32>
    %159 = arith.divf %157, %158 : vector<2x32xf32>
    %160 = arith.mulf %151, %100 : vector<2x32xf32>
    %161 = arith.mulf %145, %153 : vector<2x32xf32>
    %162 = arith.addf %160, %161 : vector<2x32xf32>
    %163 = math.tanh %162 : vector<2x32xf32>
    %164 = arith.mulf %159, %163 : vector<2x32xf32>
    %cst_41 = arith.constant dense<0.000000e+00> : vector<2x128xf32>
    %165 = tpu.matmul %164, %5, %cst_41 {dimension_numbers = #tpu.dot_dimension_numbers<[1], [0], [0], [1], [0, 0, 1, 1], [], []>} : vector<2x32xf32>, vector<32x128xf32>, vector<2x128xf32> -> vector<2x128xf32>
    %cst_42 = arith.constant dense<0.000000e+00> : vector<2x128xf32>
    %166 = tpu.matmul %132, %6, %cst_42 {dimension_numbers = #tpu.dot_dimension_numbers<[1], [0], [0], [1], [0, 0, 1, 1], [], []>} : vector<2x32xf32>, vector<32x128xf32>, vector<2x128xf32> -> vector<2x128xf32>
    %167 = arith.addf %165, %166 : vector<2x128xf32>
    %168 = vector.broadcast %7 : vector<1x128xf32> to vector<2x128xf32>
    %169 = arith.addf %167, %168 : vector<2x128xf32>
    %170 = vector.extract_strided_slice %169 {offsets = [0, 0], sizes = [2, 32], strides = [1, 1]} : vector<2x128xf32> to vector<2x32xf32>
    %171 = arith.negf %170 : vector<2x32xf32>
    %172 = math.exp %171 : vector<2x32xf32>
    %cst_43 = arith.constant 1.000000e+00 : f32
    %173 = vector.broadcast %cst_43 : f32 to vector<2x32xf32>
    %174 = arith.addf %173, %172 : vector<2x32xf32>
    %175 = arith.divf %173, %174 : vector<2x32xf32>
    %176 = vector.extract_strided_slice %169 {offsets = [0, 32], sizes = [2, 32], strides = [1, 1]} : vector<2x128xf32> to vector<2x32xf32>
    %177 = arith.negf %176 : vector<2x32xf32>
    %178 = math.exp %177 : vector<2x32xf32>
    %cst_44 = arith.constant 1.000000e+00 : f32
    %179 = vector.broadcast %cst_44 : f32 to vector<2x32xf32>
    %180 = arith.addf %179, %178 : vector<2x32xf32>
    %181 = arith.divf %179, %180 : vector<2x32xf32>
    %182 = vector.extract_strided_slice %169 {offsets = [0, 64], sizes = [2, 32], strides = [1, 1]} : vector<2x128xf32> to vector<2x32xf32>
    %183 = math.tanh %182 : vector<2x32xf32>
    %184 = vector.extract_strided_slice %169 {offsets = [0, 96], sizes = [2, 32], strides = [1, 1]} : vector<2x128xf32> to vector<2x32xf32>
    %185 = arith.negf %184 : vector<2x32xf32>
    %186 = math.exp %185 : vector<2x32xf32>
    %cst_45 = arith.constant 1.000000e+00 : f32
    %187 = vector.broadcast %cst_45 : f32 to vector<2x32xf32>
    %188 = arith.addf %187, %186 : vector<2x32xf32>
    %189 = arith.divf %187, %188 : vector<2x32xf32>
    %190 = arith.mulf %181, %130 : vector<2x32xf32>
    %191 = arith.mulf %175, %183 : vector<2x32xf32>
    %192 = arith.addf %190, %191 : vector<2x32xf32>
    %193 = math.tanh %192 : vector<2x32xf32>
    %194 = arith.mulf %189, %193 : vector<2x32xf32>
    %195 = vector.extract_strided_slice %0 {offsets = [0, 3, 0], sizes = [2, 1, 16], strides = [1, 1, 1]} : vector<2x8x16xf32> to vector<2x1x16xf32>
    %196 = vector.shape_cast %195 : vector<2x1x16xf32> to vector<2x16xf32>
    %cst_46 = arith.constant dense<0.000000e+00> : vector<2x128xf32>
    %197 = tpu.matmul %196, %2, %cst_46 {dimension_numbers = #tpu.dot_dimension_numbers<[1], [0], [0], [1], [0, 0, 1, 1], [], []>} : vector<2x16xf32>, vector<16x128xf32>, vector<2x128xf32> -> vector<2x128xf32>
    %cst_47 = arith.constant dense<0.000000e+00> : vector<2x128xf32>
    %198 = tpu.matmul %164, %3, %cst_47 {dimension_numbers = #tpu.dot_dimension_numbers<[1], [0], [0], [1], [0, 0, 1, 1], [], []>} : vector<2x32xf32>, vector<32x128xf32>, vector<2x128xf32> -> vector<2x128xf32>
    %199 = arith.addf %197, %198 : vector<2x128xf32>
    %200 = vector.broadcast %4 : vector<1x128xf32> to vector<2x128xf32>
    %201 = arith.addf %199, %200 : vector<2x128xf32>
    %202 = vector.extract_strided_slice %201 {offsets = [0, 0], sizes = [2, 32], strides = [1, 1]} : vector<2x128xf32> to vector<2x32xf32>
    %203 = arith.negf %202 : vector<2x32xf32>
    %204 = math.exp %203 : vector<2x32xf32>
    %cst_48 = arith.constant 1.000000e+00 : f32
    %205 = vector.broadcast %cst_48 : f32 to vector<2x32xf32>
    %206 = arith.addf %205, %204 : vector<2x32xf32>
    %207 = arith.divf %205, %206 : vector<2x32xf32>
    %208 = vector.extract_strided_slice %201 {offsets = [0, 32], sizes = [2, 32], strides = [1, 1]} : vector<2x128xf32> to vector<2x32xf32>
    %209 = arith.negf %208 : vector<2x32xf32>
    %210 = math.exp %209 : vector<2x32xf32>
    %cst_49 = arith.constant 1.000000e+00 : f32
    %211 = vector.broadcast %cst_49 : f32 to vector<2x32xf32>
    %212 = arith.addf %211, %210 : vector<2x32xf32>
    %213 = arith.divf %211, %212 : vector<2x32xf32>
    %214 = vector.extract_strided_slice %201 {offsets = [0, 64], sizes = [2, 32], strides = [1, 1]} : vector<2x128xf32> to vector<2x32xf32>
    %215 = math.tanh %214 : vector<2x32xf32>
    %216 = vector.extract_strided_slice %201 {offsets = [0, 96], sizes = [2, 32], strides = [1, 1]} : vector<2x128xf32> to vector<2x32xf32>
    %217 = arith.negf %216 : vector<2x32xf32>
    %218 = math.exp %217 : vector<2x32xf32>
    %cst_50 = arith.constant 1.000000e+00 : f32
    %219 = vector.broadcast %cst_50 : f32 to vector<2x32xf32>
    %220 = arith.addf %219, %218 : vector<2x32xf32>
    %221 = arith.divf %219, %220 : vector<2x32xf32>
    %222 = arith.mulf %213, %162 : vector<2x32xf32>
    %223 = arith.mulf %207, %215 : vector<2x32xf32>
    %224 = arith.addf %222, %223 : vector<2x32xf32>
    %225 = math.tanh %224 : vector<2x32xf32>
    %226 = arith.mulf %221, %225 : vector<2x32xf32>
    %cst_51 = arith.constant dense<0.000000e+00> : vector<2x128xf32>
    %227 = tpu.matmul %226, %5, %cst_51 {dimension_numbers = #tpu.dot_dimension_numbers<[1], [0], [0], [1], [0, 0, 1, 1], [], []>} : vector<2x32xf32>, vector<32x128xf32>, vector<2x128xf32> -> vector<2x128xf32>
    %cst_52 = arith.constant dense<0.000000e+00> : vector<2x128xf32>
    %228 = tpu.matmul %194, %6, %cst_52 {dimension_numbers = #tpu.dot_dimension_numbers<[1], [0], [0], [1], [0, 0, 1, 1], [], []>} : vector<2x32xf32>, vector<32x128xf32>, vector<2x128xf32> -> vector<2x128xf32>
    %229 = arith.addf %227, %228 : vector<2x128xf32>
    %230 = vector.broadcast %7 : vector<1x128xf32> to vector<2x128xf32>
    %231 = arith.addf %229, %230 : vector<2x128xf32>
    %232 = vector.extract_strided_slice %231 {offsets = [0, 0], sizes = [2, 32], strides = [1, 1]} : vector<2x128xf32> to vector<2x32xf32>
    %233 = arith.negf %232 : vector<2x32xf32>
    %234 = math.exp %233 : vector<2x32xf32>
    %cst_53 = arith.constant 1.000000e+00 : f32
    %235 = vector.broadcast %cst_53 : f32 to vector<2x32xf32>
    %236 = arith.addf %235, %234 : vector<2x32xf32>
    %237 = arith.divf %235, %236 : vector<2x32xf32>
    %238 = vector.extract_strided_slice %231 {offsets = [0, 32], sizes = [2, 32], strides = [1, 1]} : vector<2x128xf32> to vector<2x32xf32>
    %239 = arith.negf %238 : vector<2x32xf32>
    %240 = math.exp %239 : vector<2x32xf32>
    %cst_54 = arith.constant 1.000000e+00 : f32
    %241 = vector.broadcast %cst_54 : f32 to vector<2x32xf32>
    %242 = arith.addf %241, %240 : vector<2x32xf32>
    %243 = arith.divf %241, %242 : vector<2x32xf32>
    %244 = vector.extract_strided_slice %231 {offsets = [0, 64], sizes = [2, 32], strides = [1, 1]} : vector<2x128xf32> to vector<2x32xf32>
    %245 = math.tanh %244 : vector<2x32xf32>
    %246 = vector.extract_strided_slice %231 {offsets = [0, 96], sizes = [2, 32], strides = [1, 1]} : vector<2x128xf32> to vector<2x32xf32>
    %247 = arith.negf %246 : vector<2x32xf32>
    %248 = math.exp %247 : vector<2x32xf32>
    %cst_55 = arith.constant 1.000000e+00 : f32
    %249 = vector.broadcast %cst_55 : f32 to vector<2x32xf32>
    %250 = arith.addf %249, %248 : vector<2x32xf32>
    %251 = arith.divf %249, %250 : vector<2x32xf32>
    %252 = arith.mulf %243, %192 : vector<2x32xf32>
    %253 = arith.mulf %237, %245 : vector<2x32xf32>
    %254 = arith.addf %252, %253 : vector<2x32xf32>
    %255 = math.tanh %254 : vector<2x32xf32>
    %256 = arith.mulf %251, %255 : vector<2x32xf32>
    %257 = vector.extract_strided_slice %0 {offsets = [0, 4, 0], sizes = [2, 1, 16], strides = [1, 1, 1]} : vector<2x8x16xf32> to vector<2x1x16xf32>
    %258 = vector.shape_cast %257 : vector<2x1x16xf32> to vector<2x16xf32>
    %cst_56 = arith.constant dense<0.000000e+00> : vector<2x128xf32>
    %259 = tpu.matmul %258, %2, %cst_56 {dimension_numbers = #tpu.dot_dimension_numbers<[1], [0], [0], [1], [0, 0, 1, 1], [], []>} : vector<2x16xf32>, vector<16x128xf32>, vector<2x128xf32> -> vector<2x128xf32>
    %cst_57 = arith.constant dense<0.000000e+00> : vector<2x128xf32>
    %260 = tpu.matmul %226, %3, %cst_57 {dimension_numbers = #tpu.dot_dimension_numbers<[1], [0], [0], [1], [0, 0, 1, 1], [], []>} : vector<2x32xf32>, vector<32x128xf32>, vector<2x128xf32> -> vector<2x128xf32>
    %261 = arith.addf %259, %260 : vector<2x128xf32>
    %262 = vector.broadcast %4 : vector<1x128xf32> to vector<2x128xf32>
    %263 = arith.addf %261, %262 : vector<2x128xf32>
    %264 = vector.extract_strided_slice %263 {offsets = [0, 0], sizes = [2, 32], strides = [1, 1]} : vector<2x128xf32> to vector<2x32xf32>
    %265 = arith.negf %264 : vector<2x32xf32>
    %266 = math.exp %265 : vector<2x32xf32>
    %cst_58 = arith.constant 1.000000e+00 : f32
    %267 = vector.broadcast %cst_58 : f32 to vector<2x32xf32>
    %268 = arith.addf %267, %266 : vector<2x32xf32>
    %269 = arith.divf %267, %268 : vector<2x32xf32>
    %270 = vector.extract_strided_slice %263 {offsets = [0, 32], sizes = [2, 32], strides = [1, 1]} : vector<2x128xf32> to vector<2x32xf32>
    %271 = arith.negf %270 : vector<2x32xf32>
    %272 = math.exp %271 : vector<2x32xf32>
    %cst_59 = arith.constant 1.000000e+00 : f32
    %273 = vector.broadcast %cst_59 : f32 to vector<2x32xf32>
    %274 = arith.addf %273, %272 : vector<2x32xf32>
    %275 = arith.divf %273, %274 : vector<2x32xf32>
    %276 = vector.extract_strided_slice %263 {offsets = [0, 64], sizes = [2, 32], strides = [1, 1]} : vector<2x128xf32> to vector<2x32xf32>
    %277 = math.tanh %276 : vector<2x32xf32>
    %278 = vector.extract_strided_slice %263 {offsets = [0, 96], sizes = [2, 32], strides = [1, 1]} : vector<2x128xf32> to vector<2x32xf32>
    %279 = arith.negf %278 : vector<2x32xf32>
    %280 = math.exp %279 : vector<2x32xf32>
    %cst_60 = arith.constant 1.000000e+00 : f32
    %281 = vector.broadcast %cst_60 : f32 to vector<2x32xf32>
    %282 = arith.addf %281, %280 : vector<2x32xf32>
    %283 = arith.divf %281, %282 : vector<2x32xf32>
    %284 = arith.mulf %275, %224 : vector<2x32xf32>
    %285 = arith.mulf %269, %277 : vector<2x32xf32>
    %286 = arith.addf %284, %285 : vector<2x32xf32>
    %287 = math.tanh %286 : vector<2x32xf32>
    %288 = arith.mulf %283, %287 : vector<2x32xf32>
    %cst_61 = arith.constant dense<0.000000e+00> : vector<2x128xf32>
    %289 = tpu.matmul %288, %5, %cst_61 {dimension_numbers = #tpu.dot_dimension_numbers<[1], [0], [0], [1], [0, 0, 1, 1], [], []>} : vector<2x32xf32>, vector<32x128xf32>, vector<2x128xf32> -> vector<2x128xf32>
    %cst_62 = arith.constant dense<0.000000e+00> : vector<2x128xf32>
    %290 = tpu.matmul %256, %6, %cst_62 {dimension_numbers = #tpu.dot_dimension_numbers<[1], [0], [0], [1], [0, 0, 1, 1], [], []>} : vector<2x32xf32>, vector<32x128xf32>, vector<2x128xf32> -> vector<2x128xf32>
    %291 = arith.addf %289, %290 : vector<2x128xf32>
    %292 = vector.broadcast %7 : vector<1x128xf32> to vector<2x128xf32>
    %293 = arith.addf %291, %292 : vector<2x128xf32>
    %294 = vector.extract_strided_slice %293 {offsets = [0, 0], sizes = [2, 32], strides = [1, 1]} : vector<2x128xf32> to vector<2x32xf32>
    %295 = arith.negf %294 : vector<2x32xf32>
    %296 = math.exp %295 : vector<2x32xf32>
    %cst_63 = arith.constant 1.000000e+00 : f32
    %297 = vector.broadcast %cst_63 : f32 to vector<2x32xf32>
    %298 = arith.addf %297, %296 : vector<2x32xf32>
    %299 = arith.divf %297, %298 : vector<2x32xf32>
    %300 = vector.extract_strided_slice %293 {offsets = [0, 32], sizes = [2, 32], strides = [1, 1]} : vector<2x128xf32> to vector<2x32xf32>
    %301 = arith.negf %300 : vector<2x32xf32>
    %302 = math.exp %301 : vector<2x32xf32>
    %cst_64 = arith.constant 1.000000e+00 : f32
    %303 = vector.broadcast %cst_64 : f32 to vector<2x32xf32>
    %304 = arith.addf %303, %302 : vector<2x32xf32>
    %305 = arith.divf %303, %304 : vector<2x32xf32>
    %306 = vector.extract_strided_slice %293 {offsets = [0, 64], sizes = [2, 32], strides = [1, 1]} : vector<2x128xf32> to vector<2x32xf32>
    %307 = math.tanh %306 : vector<2x32xf32>
    %308 = vector.extract_strided_slice %293 {offsets = [0, 96], sizes = [2, 32], strides = [1, 1]} : vector<2x128xf32> to vector<2x32xf32>
    %309 = arith.negf %308 : vector<2x32xf32>
    %310 = math.exp %309 : vector<2x32xf32>
    %cst_65 = arith.constant 1.000000e+00 : f32
    %311 = vector.broadcast %cst_65 : f32 to vector<2x32xf32>
    %312 = arith.addf %311, %310 : vector<2x32xf32>
    %313 = arith.divf %311, %312 : vector<2x32xf32>
    %314 = arith.mulf %305, %254 : vector<2x32xf32>
    %315 = arith.mulf %299, %307 : vector<2x32xf32>
    %316 = arith.addf %314, %315 : vector<2x32xf32>
    %317 = math.tanh %316 : vector<2x32xf32>
    %318 = arith.mulf %313, %317 : vector<2x32xf32>
    %319 = vector.extract_strided_slice %0 {offsets = [0, 5, 0], sizes = [2, 1, 16], strides = [1, 1, 1]} : vector<2x8x16xf32> to vector<2x1x16xf32>
    %320 = vector.shape_cast %319 : vector<2x1x16xf32> to vector<2x16xf32>
    %cst_66 = arith.constant dense<0.000000e+00> : vector<2x128xf32>
    %321 = tpu.matmul %320, %2, %cst_66 {dimension_numbers = #tpu.dot_dimension_numbers<[1], [0], [0], [1], [0, 0, 1, 1], [], []>} : vector<2x16xf32>, vector<16x128xf32>, vector<2x128xf32> -> vector<2x128xf32>
    %cst_67 = arith.constant dense<0.000000e+00> : vector<2x128xf32>
    %322 = tpu.matmul %288, %3, %cst_67 {dimension_numbers = #tpu.dot_dimension_numbers<[1], [0], [0], [1], [0, 0, 1, 1], [], []>} : vector<2x32xf32>, vector<32x128xf32>, vector<2x128xf32> -> vector<2x128xf32>
    %323 = arith.addf %321, %322 : vector<2x128xf32>
    %324 = vector.broadcast %4 : vector<1x128xf32> to vector<2x128xf32>
    %325 = arith.addf %323, %324 : vector<2x128xf32>
    %326 = vector.extract_strided_slice %325 {offsets = [0, 0], sizes = [2, 32], strides = [1, 1]} : vector<2x128xf32> to vector<2x32xf32>
    %327 = arith.negf %326 : vector<2x32xf32>
    %328 = math.exp %327 : vector<2x32xf32>
    %cst_68 = arith.constant 1.000000e+00 : f32
    %329 = vector.broadcast %cst_68 : f32 to vector<2x32xf32>
    %330 = arith.addf %329, %328 : vector<2x32xf32>
    %331 = arith.divf %329, %330 : vector<2x32xf32>
    %332 = vector.extract_strided_slice %325 {offsets = [0, 32], sizes = [2, 32], strides = [1, 1]} : vector<2x128xf32> to vector<2x32xf32>
    %333 = arith.negf %332 : vector<2x32xf32>
    %334 = math.exp %333 : vector<2x32xf32>
    %cst_69 = arith.constant 1.000000e+00 : f32
    %335 = vector.broadcast %cst_69 : f32 to vector<2x32xf32>
    %336 = arith.addf %335, %334 : vector<2x32xf32>
    %337 = arith.divf %335, %336 : vector<2x32xf32>
    %338 = vector.extract_strided_slice %325 {offsets = [0, 64], sizes = [2, 32], strides = [1, 1]} : vector<2x128xf32> to vector<2x32xf32>
    %339 = math.tanh %338 : vector<2x32xf32>
    %340 = vector.extract_strided_slice %325 {offsets = [0, 96], sizes = [2, 32], strides = [1, 1]} : vector<2x128xf32> to vector<2x32xf32>
    %341 = arith.negf %340 : vector<2x32xf32>
    %342 = math.exp %341 : vector<2x32xf32>
    %cst_70 = arith.constant 1.000000e+00 : f32
    %343 = vector.broadcast %cst_70 : f32 to vector<2x32xf32>
    %344 = arith.addf %343, %342 : vector<2x32xf32>
    %345 = arith.divf %343, %344 : vector<2x32xf32>
    %346 = arith.mulf %337, %286 : vector<2x32xf32>
    %347 = arith.mulf %331, %339 : vector<2x32xf32>
    %348 = arith.addf %346, %347 : vector<2x32xf32>
    %349 = math.tanh %348 : vector<2x32xf32>
    %350 = arith.mulf %345, %349 : vector<2x32xf32>
    %cst_71 = arith.constant dense<0.000000e+00> : vector<2x128xf32>
    %351 = tpu.matmul %350, %5, %cst_71 {dimension_numbers = #tpu.dot_dimension_numbers<[1], [0], [0], [1], [0, 0, 1, 1], [], []>} : vector<2x32xf32>, vector<32x128xf32>, vector<2x128xf32> -> vector<2x128xf32>
    %cst_72 = arith.constant dense<0.000000e+00> : vector<2x128xf32>
    %352 = tpu.matmul %318, %6, %cst_72 {dimension_numbers = #tpu.dot_dimension_numbers<[1], [0], [0], [1], [0, 0, 1, 1], [], []>} : vector<2x32xf32>, vector<32x128xf32>, vector<2x128xf32> -> vector<2x128xf32>
    %353 = arith.addf %351, %352 : vector<2x128xf32>
    %354 = vector.broadcast %7 : vector<1x128xf32> to vector<2x128xf32>
    %355 = arith.addf %353, %354 : vector<2x128xf32>
    %356 = vector.extract_strided_slice %355 {offsets = [0, 0], sizes = [2, 32], strides = [1, 1]} : vector<2x128xf32> to vector<2x32xf32>
    %357 = arith.negf %356 : vector<2x32xf32>
    %358 = math.exp %357 : vector<2x32xf32>
    %cst_73 = arith.constant 1.000000e+00 : f32
    %359 = vector.broadcast %cst_73 : f32 to vector<2x32xf32>
    %360 = arith.addf %359, %358 : vector<2x32xf32>
    %361 = arith.divf %359, %360 : vector<2x32xf32>
    %362 = vector.extract_strided_slice %355 {offsets = [0, 32], sizes = [2, 32], strides = [1, 1]} : vector<2x128xf32> to vector<2x32xf32>
    %363 = arith.negf %362 : vector<2x32xf32>
    %364 = math.exp %363 : vector<2x32xf32>
    %cst_74 = arith.constant 1.000000e+00 : f32
    %365 = vector.broadcast %cst_74 : f32 to vector<2x32xf32>
    %366 = arith.addf %365, %364 : vector<2x32xf32>
    %367 = arith.divf %365, %366 : vector<2x32xf32>
    %368 = vector.extract_strided_slice %355 {offsets = [0, 64], sizes = [2, 32], strides = [1, 1]} : vector<2x128xf32> to vector<2x32xf32>
    %369 = math.tanh %368 : vector<2x32xf32>
    %370 = vector.extract_strided_slice %355 {offsets = [0, 96], sizes = [2, 32], strides = [1, 1]} : vector<2x128xf32> to vector<2x32xf32>
    %371 = arith.negf %370 : vector<2x32xf32>
    %372 = math.exp %371 : vector<2x32xf32>
    %cst_75 = arith.constant 1.000000e+00 : f32
    %373 = vector.broadcast %cst_75 : f32 to vector<2x32xf32>
    %374 = arith.addf %373, %372 : vector<2x32xf32>
    %375 = arith.divf %373, %374 : vector<2x32xf32>
    %376 = arith.mulf %367, %316 : vector<2x32xf32>
    %377 = arith.mulf %361, %369 : vector<2x32xf32>
    %378 = arith.addf %376, %377 : vector<2x32xf32>
    %379 = math.tanh %378 : vector<2x32xf32>
    %380 = arith.mulf %375, %379 : vector<2x32xf32>
    %381 = vector.extract_strided_slice %0 {offsets = [0, 6, 0], sizes = [2, 1, 16], strides = [1, 1, 1]} : vector<2x8x16xf32> to vector<2x1x16xf32>
    %382 = vector.shape_cast %381 : vector<2x1x16xf32> to vector<2x16xf32>
    %cst_76 = arith.constant dense<0.000000e+00> : vector<2x128xf32>
    %383 = tpu.matmul %382, %2, %cst_76 {dimension_numbers = #tpu.dot_dimension_numbers<[1], [0], [0], [1], [0, 0, 1, 1], [], []>} : vector<2x16xf32>, vector<16x128xf32>, vector<2x128xf32> -> vector<2x128xf32>
    %cst_77 = arith.constant dense<0.000000e+00> : vector<2x128xf32>
    %384 = tpu.matmul %350, %3, %cst_77 {dimension_numbers = #tpu.dot_dimension_numbers<[1], [0], [0], [1], [0, 0, 1, 1], [], []>} : vector<2x32xf32>, vector<32x128xf32>, vector<2x128xf32> -> vector<2x128xf32>
    %385 = arith.addf %383, %384 : vector<2x128xf32>
    %386 = vector.broadcast %4 : vector<1x128xf32> to vector<2x128xf32>
    %387 = arith.addf %385, %386 : vector<2x128xf32>
    %388 = vector.extract_strided_slice %387 {offsets = [0, 0], sizes = [2, 32], strides = [1, 1]} : vector<2x128xf32> to vector<2x32xf32>
    %389 = arith.negf %388 : vector<2x32xf32>
    %390 = math.exp %389 : vector<2x32xf32>
    %cst_78 = arith.constant 1.000000e+00 : f32
    %391 = vector.broadcast %cst_78 : f32 to vector<2x32xf32>
    %392 = arith.addf %391, %390 : vector<2x32xf32>
    %393 = arith.divf %391, %392 : vector<2x32xf32>
    %394 = vector.extract_strided_slice %387 {offsets = [0, 32], sizes = [2, 32], strides = [1, 1]} : vector<2x128xf32> to vector<2x32xf32>
    %395 = arith.negf %394 : vector<2x32xf32>
    %396 = math.exp %395 : vector<2x32xf32>
    %cst_79 = arith.constant 1.000000e+00 : f32
    %397 = vector.broadcast %cst_79 : f32 to vector<2x32xf32>
    %398 = arith.addf %397, %396 : vector<2x32xf32>
    %399 = arith.divf %397, %398 : vector<2x32xf32>
    %400 = vector.extract_strided_slice %387 {offsets = [0, 64], sizes = [2, 32], strides = [1, 1]} : vector<2x128xf32> to vector<2x32xf32>
    %401 = math.tanh %400 : vector<2x32xf32>
    %402 = vector.extract_strided_slice %387 {offsets = [0, 96], sizes = [2, 32], strides = [1, 1]} : vector<2x128xf32> to vector<2x32xf32>
    %403 = arith.negf %402 : vector<2x32xf32>
    %404 = math.exp %403 : vector<2x32xf32>
    %cst_80 = arith.constant 1.000000e+00 : f32
    %405 = vector.broadcast %cst_80 : f32 to vector<2x32xf32>
    %406 = arith.addf %405, %404 : vector<2x32xf32>
    %407 = arith.divf %405, %406 : vector<2x32xf32>
    %408 = arith.mulf %399, %348 : vector<2x32xf32>
    %409 = arith.mulf %393, %401 : vector<2x32xf32>
    %410 = arith.addf %408, %409 : vector<2x32xf32>
    %411 = math.tanh %410 : vector<2x32xf32>
    %412 = arith.mulf %407, %411 : vector<2x32xf32>
    %cst_81 = arith.constant dense<0.000000e+00> : vector<2x128xf32>
    %413 = tpu.matmul %412, %5, %cst_81 {dimension_numbers = #tpu.dot_dimension_numbers<[1], [0], [0], [1], [0, 0, 1, 1], [], []>} : vector<2x32xf32>, vector<32x128xf32>, vector<2x128xf32> -> vector<2x128xf32>
    %cst_82 = arith.constant dense<0.000000e+00> : vector<2x128xf32>
    %414 = tpu.matmul %380, %6, %cst_82 {dimension_numbers = #tpu.dot_dimension_numbers<[1], [0], [0], [1], [0, 0, 1, 1], [], []>} : vector<2x32xf32>, vector<32x128xf32>, vector<2x128xf32> -> vector<2x128xf32>
    %415 = arith.addf %413, %414 : vector<2x128xf32>
    %416 = vector.broadcast %7 : vector<1x128xf32> to vector<2x128xf32>
    %417 = arith.addf %415, %416 : vector<2x128xf32>
    %418 = vector.extract_strided_slice %417 {offsets = [0, 0], sizes = [2, 32], strides = [1, 1]} : vector<2x128xf32> to vector<2x32xf32>
    %419 = arith.negf %418 : vector<2x32xf32>
    %420 = math.exp %419 : vector<2x32xf32>
    %cst_83 = arith.constant 1.000000e+00 : f32
    %421 = vector.broadcast %cst_83 : f32 to vector<2x32xf32>
    %422 = arith.addf %421, %420 : vector<2x32xf32>
    %423 = arith.divf %421, %422 : vector<2x32xf32>
    %424 = vector.extract_strided_slice %417 {offsets = [0, 32], sizes = [2, 32], strides = [1, 1]} : vector<2x128xf32> to vector<2x32xf32>
    %425 = arith.negf %424 : vector<2x32xf32>
    %426 = math.exp %425 : vector<2x32xf32>
    %cst_84 = arith.constant 1.000000e+00 : f32
    %427 = vector.broadcast %cst_84 : f32 to vector<2x32xf32>
    %428 = arith.addf %427, %426 : vector<2x32xf32>
    %429 = arith.divf %427, %428 : vector<2x32xf32>
    %430 = vector.extract_strided_slice %417 {offsets = [0, 64], sizes = [2, 32], strides = [1, 1]} : vector<2x128xf32> to vector<2x32xf32>
    %431 = math.tanh %430 : vector<2x32xf32>
    %432 = vector.extract_strided_slice %417 {offsets = [0, 96], sizes = [2, 32], strides = [1, 1]} : vector<2x128xf32> to vector<2x32xf32>
    %433 = arith.negf %432 : vector<2x32xf32>
    %434 = math.exp %433 : vector<2x32xf32>
    %cst_85 = arith.constant 1.000000e+00 : f32
    %435 = vector.broadcast %cst_85 : f32 to vector<2x32xf32>
    %436 = arith.addf %435, %434 : vector<2x32xf32>
    %437 = arith.divf %435, %436 : vector<2x32xf32>
    %438 = arith.mulf %429, %378 : vector<2x32xf32>
    %439 = arith.mulf %423, %431 : vector<2x32xf32>
    %440 = arith.addf %438, %439 : vector<2x32xf32>
    %441 = math.tanh %440 : vector<2x32xf32>
    %442 = arith.mulf %437, %441 : vector<2x32xf32>
    %443 = vector.extract_strided_slice %0 {offsets = [0, 7, 0], sizes = [2, 1, 16], strides = [1, 1, 1]} : vector<2x8x16xf32> to vector<2x1x16xf32>
    %444 = vector.shape_cast %443 : vector<2x1x16xf32> to vector<2x16xf32>
    %cst_86 = arith.constant dense<0.000000e+00> : vector<2x128xf32>
    %445 = tpu.matmul %444, %2, %cst_86 {dimension_numbers = #tpu.dot_dimension_numbers<[1], [0], [0], [1], [0, 0, 1, 1], [], []>} : vector<2x16xf32>, vector<16x128xf32>, vector<2x128xf32> -> vector<2x128xf32>
    %cst_87 = arith.constant dense<0.000000e+00> : vector<2x128xf32>
    %446 = tpu.matmul %412, %3, %cst_87 {dimension_numbers = #tpu.dot_dimension_numbers<[1], [0], [0], [1], [0, 0, 1, 1], [], []>} : vector<2x32xf32>, vector<32x128xf32>, vector<2x128xf32> -> vector<2x128xf32>
    %447 = arith.addf %445, %446 : vector<2x128xf32>
    %448 = vector.broadcast %4 : vector<1x128xf32> to vector<2x128xf32>
    %449 = arith.addf %447, %448 : vector<2x128xf32>
    %450 = vector.extract_strided_slice %449 {offsets = [0, 0], sizes = [2, 32], strides = [1, 1]} : vector<2x128xf32> to vector<2x32xf32>
    %451 = arith.negf %450 : vector<2x32xf32>
    %452 = math.exp %451 : vector<2x32xf32>
    %cst_88 = arith.constant 1.000000e+00 : f32
    %453 = vector.broadcast %cst_88 : f32 to vector<2x32xf32>
    %454 = arith.addf %453, %452 : vector<2x32xf32>
    %455 = arith.divf %453, %454 : vector<2x32xf32>
    %456 = vector.extract_strided_slice %449 {offsets = [0, 32], sizes = [2, 32], strides = [1, 1]} : vector<2x128xf32> to vector<2x32xf32>
    %457 = arith.negf %456 : vector<2x32xf32>
    %458 = math.exp %457 : vector<2x32xf32>
    %cst_89 = arith.constant 1.000000e+00 : f32
    %459 = vector.broadcast %cst_89 : f32 to vector<2x32xf32>
    %460 = arith.addf %459, %458 : vector<2x32xf32>
    %461 = arith.divf %459, %460 : vector<2x32xf32>
    %462 = vector.extract_strided_slice %449 {offsets = [0, 64], sizes = [2, 32], strides = [1, 1]} : vector<2x128xf32> to vector<2x32xf32>
    %463 = math.tanh %462 : vector<2x32xf32>
    %464 = vector.extract_strided_slice %449 {offsets = [0, 96], sizes = [2, 32], strides = [1, 1]} : vector<2x128xf32> to vector<2x32xf32>
    %465 = arith.negf %464 : vector<2x32xf32>
    %466 = math.exp %465 : vector<2x32xf32>
    %cst_90 = arith.constant 1.000000e+00 : f32
    %467 = vector.broadcast %cst_90 : f32 to vector<2x32xf32>
    %468 = arith.addf %467, %466 : vector<2x32xf32>
    %469 = arith.divf %467, %468 : vector<2x32xf32>
    %470 = arith.mulf %461, %410 : vector<2x32xf32>
    %471 = arith.mulf %455, %463 : vector<2x32xf32>
    %472 = arith.addf %470, %471 : vector<2x32xf32>
    %473 = math.tanh %472 : vector<2x32xf32>
    %474 = arith.mulf %469, %473 : vector<2x32xf32>
    %cst_91 = arith.constant dense<0.000000e+00> : vector<2x128xf32>
    %475 = tpu.matmul %474, %5, %cst_91 {dimension_numbers = #tpu.dot_dimension_numbers<[1], [0], [0], [1], [0, 0, 1, 1], [], []>} : vector<2x32xf32>, vector<32x128xf32>, vector<2x128xf32> -> vector<2x128xf32>
    %cst_92 = arith.constant dense<0.000000e+00> : vector<2x128xf32>
    %476 = tpu.matmul %442, %6, %cst_92 {dimension_numbers = #tpu.dot_dimension_numbers<[1], [0], [0], [1], [0, 0, 1, 1], [], []>} : vector<2x32xf32>, vector<32x128xf32>, vector<2x128xf32> -> vector<2x128xf32>
    %477 = arith.addf %475, %476 : vector<2x128xf32>
    %478 = vector.broadcast %7 : vector<1x128xf32> to vector<2x128xf32>
    %479 = arith.addf %477, %478 : vector<2x128xf32>
    %480 = vector.extract_strided_slice %479 {offsets = [0, 0], sizes = [2, 32], strides = [1, 1]} : vector<2x128xf32> to vector<2x32xf32>
    %481 = arith.negf %480 : vector<2x32xf32>
    %482 = math.exp %481 : vector<2x32xf32>
    %cst_93 = arith.constant 1.000000e+00 : f32
    %483 = vector.broadcast %cst_93 : f32 to vector<2x32xf32>
    %484 = arith.addf %483, %482 : vector<2x32xf32>
    %485 = arith.divf %483, %484 : vector<2x32xf32>
    %486 = vector.extract_strided_slice %479 {offsets = [0, 32], sizes = [2, 32], strides = [1, 1]} : vector<2x128xf32> to vector<2x32xf32>
    %487 = arith.negf %486 : vector<2x32xf32>
    %488 = math.exp %487 : vector<2x32xf32>
    %cst_94 = arith.constant 1.000000e+00 : f32
    %489 = vector.broadcast %cst_94 : f32 to vector<2x32xf32>
    %490 = arith.addf %489, %488 : vector<2x32xf32>
    %491 = arith.divf %489, %490 : vector<2x32xf32>
    %492 = vector.extract_strided_slice %479 {offsets = [0, 64], sizes = [2, 32], strides = [1, 1]} : vector<2x128xf32> to vector<2x32xf32>
    %493 = math.tanh %492 : vector<2x32xf32>
    %494 = vector.extract_strided_slice %479 {offsets = [0, 96], sizes = [2, 32], strides = [1, 1]} : vector<2x128xf32> to vector<2x32xf32>
    %495 = arith.negf %494 : vector<2x32xf32>
    %496 = math.exp %495 : vector<2x32xf32>
    %cst_95 = arith.constant 1.000000e+00 : f32
    %497 = vector.broadcast %cst_95 : f32 to vector<2x32xf32>
    %498 = arith.addf %497, %496 : vector<2x32xf32>
    %499 = arith.divf %497, %498 : vector<2x32xf32>
    %500 = arith.mulf %491, %440 : vector<2x32xf32>
    %501 = arith.mulf %485, %493 : vector<2x32xf32>
    %502 = arith.addf %500, %501 : vector<2x32xf32>
    %503 = math.tanh %502 : vector<2x32xf32>
    %504 = arith.mulf %499, %503 : vector<2x32xf32>
    %c0_96 = arith.constant 0 : index
    %c0_97 = arith.constant 0 : index
    %505 = vector.load %arg8[%c0_96, %c0_97] : memref<36x64xf32, #tpu.memory_space<vmem>>, vector<32x64xf32>
    %cst_98 = arith.constant dense<0.000000e+00> : vector<2x64xf32>
    %506 = tpu.matmul %504, %505, %cst_98 {dimension_numbers = #tpu.dot_dimension_numbers<[1], [0], [0], [1], [0, 0, 1, 1], [], []>} : vector<2x32xf32>, vector<32x64xf32>, vector<2x64xf32> -> vector<2x64xf32>
    %c32 = arith.constant 32 : index
    %c0_99 = arith.constant 0 : index
    %507 = vector.load %arg8[%c32, %c0_99] : memref<36x64xf32, #tpu.memory_space<vmem>>, vector<4x64xf32>
    %cst_100 = arith.constant dense<0.000000e+00> : vector<2x64xf32>
    %508 = tpu.matmul %1, %507, %cst_100 {dimension_numbers = #tpu.dot_dimension_numbers<[1], [0], [0], [1], [0, 0, 1, 1], [], []>} : vector<2x4xf32>, vector<4x64xf32>, vector<2x64xf32> -> vector<2x64xf32>
    %509 = arith.addf %506, %508 : vector<2x64xf32>
    %c0_101 = arith.constant 0 : index
    %c0_102 = arith.constant 0 : index
    %510 = vector.load %arg9[%c0_101, %c0_102] : memref<1x64xf32, #tpu.memory_space<vmem>>, vector<1x64xf32>
    %511 = vector.broadcast %510 : vector<1x64xf32> to vector<2x64xf32>
    %512 = arith.addf %509, %511 : vector<2x64xf32>
    %cst_103 = arith.constant 0.00999999977 : f32
    %513 = vector.broadcast %cst_103 : f32 to vector<2x64xf32>
    %514 = arith.mulf %513, %512 : vector<2x64xf32>
    %515 = arith.maximumf %512, %514 : vector<2x64xf32>
    %c0_104 = arith.constant 0 : index
    %c0_105 = arith.constant 0 : index
    %516 = vector.load %arg10[%c0_104, %c0_105] : memref<64x32xf32, #tpu.memory_space<vmem>>, vector<64x32xf32>
    %cst_106 = arith.constant dense<0.000000e+00> : vector<2x32xf32>
    %517 = tpu.matmul %515, %516, %cst_106 {dimension_numbers = #tpu.dot_dimension_numbers<[1], [0], [0], [1], [0, 0, 1, 1], [], []>} : vector<2x64xf32>, vector<64x32xf32>, vector<2x32xf32> -> vector<2x32xf32>
    %c0_107 = arith.constant 0 : index
    %c0_108 = arith.constant 0 : index
    %518 = vector.load %arg11[%c0_107, %c0_108] : memref<1x32xf32, #tpu.memory_space<vmem>>, vector<1x32xf32>
    %519 = vector.broadcast %518 : vector<1x32xf32> to vector<2x32xf32>
    %520 = arith.addf %517, %519 : vector<2x32xf32>
    %cst_109 = arith.constant 0.00999999977 : f32
    %521 = vector.broadcast %cst_109 : f32 to vector<2x32xf32>
    %522 = arith.mulf %521, %520 : vector<2x32xf32>
    %523 = arith.maximumf %520, %522 : vector<2x32xf32>
    %c0_110 = arith.constant 0 : index
    %c0_111 = arith.constant 0 : index
    %524 = vector.load %arg12[%c0_110, %c0_111] : memref<32x16xf32, #tpu.memory_space<vmem>>, vector<32x16xf32>
    %cst_112 = arith.constant dense<0.000000e+00> : vector<2x16xf32>
    %525 = tpu.matmul %523, %524, %cst_112 {dimension_numbers = #tpu.dot_dimension_numbers<[1], [0], [0], [1], [0, 0, 1, 1], [], []>} : vector<2x32xf32>, vector<32x16xf32>, vector<2x16xf32> -> vector<2x16xf32>
    %c0_113 = arith.constant 0 : index
    %c0_114 = arith.constant 0 : index
    %526 = vector.load %arg13[%c0_113, %c0_114] : memref<1x16xf32, #tpu.memory_space<vmem>>, vector<1x16xf32>
    %527 = vector.broadcast %526 : vector<1x16xf32> to vector<2x16xf32>
    %528 = arith.addf %525, %527 : vector<2x16xf32>
    %cst_115 = arith.constant 0.00999999977 : f32
    %529 = vector.broadcast %cst_115 : f32 to vector<2x16xf32>
    %530 = arith.mulf %529, %528 : vector<2x16xf32>
    %531 = arith.maximumf %528, %530 : vector<2x16xf32>
    %c0_116 = arith.constant 0 : index
    %c0_117 = arith.constant 0 : index
    %532 = vector.load %arg14[%c0_116, %c0_117] : memref<16x4xf32, #tpu.memory_space<vmem>>, vector<16x4xf32>
    %cst_118 = arith.constant dense<0.000000e+00> : vector<2x4xf32>
    %533 = tpu.matmul %531, %532, %cst_118 {dimension_numbers = #tpu.dot_dimension_numbers<[1], [0], [0], [1], [0, 0, 1, 1], [], []>} : vector<2x16xf32>, vector<16x4xf32>, vector<2x4xf32> -> vector<2x4xf32>
    %c0_119 = arith.constant 0 : index
    %c0_120 = arith.constant 0 : index
    %534 = vector.load %arg15[%c0_119, %c0_120] : memref<1x4xf32, #tpu.memory_space<vmem>>, vector<1x4xf32>
    %535 = vector.broadcast %534 : vector<1x4xf32> to vector<2x4xf32>
    %536 = arith.addf %533, %535 : vector<2x4xf32>
    %cst_121 = arith.constant dense<0xFF800000> : vector<2xf32>
    %537 = vector.multi_reduction <maximumf>, %536, %cst_121 [1] : vector<2x4xf32> to vector<2xf32>
    %538 = vector.shape_cast %537 : vector<2xf32> to vector<2x1xf32>
    %539 = vector.broadcast %538 : vector<2x1xf32> to vector<2x4xf32>
    %540 = arith.subf %536, %539 : vector<2x4xf32>
    %541 = math.exp %540 : vector<2x4xf32>
    %cst_122 = arith.constant dense<0.000000e+00> : vector<2xf32>
    %542 = vector.multi_reduction <add>, %541, %cst_122 [1] : vector<2x4xf32> to vector<2xf32>
    %543 = vector.shape_cast %542 : vector<2xf32> to vector<2x1xf32>
    %544 = tpu.reciprocal %543 {approx = true} : vector<2x1xf32> -> vector<2x1xf32>
    %545 = vector.broadcast %544 : vector<2x1xf32> to vector<2x4xf32>
    %546 = arith.mulf %541, %545 : vector<2x4xf32>
    %c0_123 = arith.constant 0 : index
    %c0_124 = arith.constant 0 : index
    %547 = vector.load %arg22[%c0_123, %c0_124] : memref<2x4xf32, #tpu.memory_space<vmem>>, vector<2x4xf32>
    tpu.vector_store %arg22[%c0_123, %c0_124], %546 {strides = array<i32>} : memref<2x4xf32, #tpu.memory_space<vmem>>, vector<2x4xf32>,
    %c0_125 = arith.constant 0 : index
    %c0_126 = arith.constant 0 : index
    %548 = vector.load %arg16[%c0_125, %c0_126] : memref<40x64xf32, #tpu.memory_space<vmem>>, vector<32x64xf32>
    %cst_127 = arith.constant dense<0.000000e+00> : vector<2x64xf32>
    %549 = tpu.matmul %504, %548, %cst_127 {dimension_numbers = #tpu.dot_dimension_numbers<[1], [0], [0], [1], [0, 0, 1, 1], [], []>} : vector<2x32xf32>, vector<32x64xf32>, vector<2x64xf32> -> vector<2x64xf32>
    %c32_128 = arith.constant 32 : index
    %c0_129 = arith.constant 0 : index
    %550 = vector.load %arg16[%c32_128, %c0_129] : memref<40x64xf32, #tpu.memory_space<vmem>>, vector<4x64xf32>
    %cst_130 = arith.constant dense<0.000000e+00> : vector<2x64xf32>
    %551 = tpu.matmul %1, %550, %cst_130 {dimension_numbers = #tpu.dot_dimension_numbers<[1], [0], [0], [1], [0, 0, 1, 1], [], []>} : vector<2x4xf32>, vector<4x64xf32>, vector<2x64xf32> -> vector<2x64xf32>
    %552 = arith.addf %549, %551 : vector<2x64xf32>
    %c36 = arith.constant 36 : index
    %c0_131 = arith.constant 0 : index
    %553 = vector.load %arg16[%c36, %c0_131] : memref<40x64xf32, #tpu.memory_space<vmem>>, vector<4x64xf32>
    %cst_132 = arith.constant dense<0.000000e+00> : vector<2x64xf32>
    %554 = tpu.matmul %546, %553, %cst_132 {dimension_numbers = #tpu.dot_dimension_numbers<[1], [0], [0], [1], [0, 0, 1, 1], [], []>} : vector<2x4xf32>, vector<4x64xf32>, vector<2x64xf32> -> vector<2x64xf32>
    %555 = arith.addf %552, %554 : vector<2x64xf32>
    %c0_133 = arith.constant 0 : index
    %c0_134 = arith.constant 0 : index
    %556 = vector.load %arg17[%c0_133, %c0_134] : memref<1x64xf32, #tpu.memory_space<vmem>>, vector<1x64xf32>
    %557 = vector.broadcast %556 : vector<1x64xf32> to vector<2x64xf32>
    %558 = arith.addf %555, %557 : vector<2x64xf32>
    %cst_135 = arith.constant 0.00999999977 : f32
    %559 = vector.broadcast %cst_135 : f32 to vector<2x64xf32>
    %560 = arith.mulf %559, %558 : vector<2x64xf32>
    %561 = arith.maximumf %558, %560 : vector<2x64xf32>
    %c0_136 = arith.constant 0 : index
    %c0_137 = arith.constant 0 : index
    %562 = vector.load %arg18[%c0_136, %c0_137] : memref<64x8xf32, #tpu.memory_space<vmem>>, vector<64x8xf32>
    %cst_138 = arith.constant dense<0.000000e+00> : vector<2x8xf32>
    %563 = tpu.matmul %561, %562, %cst_138 {dimension_numbers = #tpu.dot_dimension_numbers<[1], [0], [0], [1], [0, 0, 1, 1], [], []>} : vector<2x64xf32>, vector<64x8xf32>, vector<2x8xf32> -> vector<2x8xf32>
    %c0_139 = arith.constant 0 : index
    %c0_140 = arith.constant 0 : index
    %564 = vector.load %arg19[%c0_139, %c0_140] : memref<1x8xf32, #tpu.memory_space<vmem>>, vector<1x8xf32>
    %565 = vector.broadcast %564 : vector<1x8xf32> to vector<2x8xf32>
    %566 = arith.addf %563, %565 : vector<2x8xf32>
    %cst_141 = arith.constant 0.00999999977 : f32
    %567 = vector.broadcast %cst_141 : f32 to vector<2x8xf32>
    %568 = arith.mulf %567, %566 : vector<2x8xf32>
    %569 = arith.maximumf %566, %568 : vector<2x8xf32>
    %c0_142 = arith.constant 0 : index
    %c0_143 = arith.constant 0 : index
    %570 = vector.load %arg20[%c0_142, %c0_143] : memref<8x1xf32, #tpu.memory_space<vmem>>, vector<8x1xf32>
    %cst_144 = arith.constant dense<0.000000e+00> : vector<2x1xf32>
    %571 = tpu.matmul %569, %570, %cst_144 {dimension_numbers = #tpu.dot_dimension_numbers<[1], [0], [0], [1], [0, 0, 1, 1], [], []>} : vector<2x8xf32>, vector<8x1xf32>, vector<2x1xf32> -> vector<2x1xf32>
    %c0_145 = arith.constant 0 : index
    %c0_146 = arith.constant 0 : index
    %572 = vector.load %arg21[%c0_145, %c0_146] : memref<1x1xf32, #tpu.memory_space<vmem>>, vector<1x1xf32>
    %573 = vector.broadcast %572 : vector<1x1xf32> to vector<2x1xf32>
    %574 = arith.addf %571, %573 : vector<2x1xf32>
    %c0_147 = arith.constant 0 : index
    %c0_148 = arith.constant 0 : index
    %575 = vector.load %arg23[%c0_147, %c0_148] : memref<2x1xf32, #tpu.memory_space<vmem>>, vector<2x1xf32>
    tpu.vector_store %arg23[%c0_147, %c0_148], %574 {strides = array<i32>} : memref<2x1xf32, #tpu.memory_space<vmem>>, vector<2x1xf32>,
    return
  }
}

</mosaic_0001>

<bundles_post_ra>
// kernel: lstm_a2c_forward.1
= control target key start
LH: loop header
LB: loop body
LE: loop exit
PB: predicated region body
PF: predicated region fallthrough
CT: control target
= control target key end

     0   :  { %s5659_s0 = inlined_call_operand.vmem [shape: f32[2,8,16], index: 0, kind: input, shape index: {}]   ;;  %s5660_s1 = inlined_call_operand.vmem [shape: f32[2,4], index: 1, kind: input, shape index: {}]   ;;  %s5661_s2 = inlined_call_operand.vmem [shape: f32[16,128], index: 2, kind: input, shape index: {}]   ;;  %s5662_s3 = inlined_call_operand.vmem [shape: f32[32,128], index: 3, kind: input, shape index: {}]   ;;  %s5663_s4 = inlined_call_operand.hbm [shape: f32[1,128], index: 4, kind: input, shape index: {}]   ;;  %s5664_s5 = inlined_call_operand.vmem [shape: f32[32,128], index: 5, kind: input, shape index: {}]   ;;  %s5665_s6 = inlined_call_operand.vmem [shape: f32[32,128], index: 6, kind: input, shape index: {}]   ;;  %s5666_s7 = inlined_call_operand.vmem [shape: f32[1,128], index: 7, kind: input, shape index: {}]   ;;  %s5667_s8 = inlined_call_operand.vmem [shape: f32[36,64], index: 8, kind: input, shape index: {}]   ;;  %s5668_s9 = inlined_call_operand.hbm [shape: f32[1,64], index: 9, kind: input, shape index: {}]   ;;  %s5669_s10 = inlined_call_operand.vmem [shape: f32[64,32], index: 10, kind: input, shape index: {}]   ;;  %s5670_s11 = inlined_call_operand.vmem [shape: f32[1,32], index: 11, kind: input, shape index: {}]   ;;  %s5671_s12 = inlined_call_operand.vmem [shape: f32[32,16], index: 12, kind: input, shape index: {}]   ;;  %s5672_s13 = inlined_call_operand.vmem [shape: f32[1,16], index: 13, kind: input, shape index: {}]   ;;  %s5673_s14 = inlined_call_operand.vmem [shape: f32[16,4], index: 14, kind: input, shape index: {}]   ;;  %s5674_s15 = inlined_call_operand.vmem [shape: f32[1,4], index: 15, kind: input, shape index: {}]   ;;  %s5675_s16 = inlined_call_operand.vmem [shape: f32[40,64], index: 16, kind: input, shape index: {}]   ;;  %s5676_s17 = inlined_call_operand.vmem [shape: f32[1,64], index: 17, kind: input, shape index: {}]   ;;  %s5677_s18 = inlined_call_operand.vmem [shape: f32[64,8], index: 18, kind: input, shape index: {}]   ;;  %s5678_s19 = inlined_call_operand.vmem [shape: f32[1,8], index: 19, kind: input, shape index: {}]   ;;  %s5679_s20 = inlined_call_operand.vmem [shape: f32[8,1], index: 20, kind: input, shape index: {}]   ;;  %s5680_s21 = inlined_call_operand.<no memory space> [shape: f32[1,1], index: 21, kind: input, shape index: {}]   ;;  %s5681_s22 = inlined_call_operand.hbm [shape: f32[2,4], index: 22, kind: output, shape index: {0}]   ;;  %s5682_s23 = inlined_call_operand.vmem [shape: f32[2,1], index: 23, kind: output, shape index: {1}]  }
   0x1   :  { %5690 = sst [smem:[#allocation12_spill]] %s5659_s0  ;;  %v29_v0 = vstv %s5680_s21 }
   0x2   :  { %5691 = sst [smem:[#allocation13_spill]] %s5660_s1  ;;  %30 = vst [vmem:[#allocation2] sm:$0x1] %v29_v0 }
   0x3   :  { %5692 = sst [smem:[#allocation14_spill]] %s5661_s2 }
   0x4   :  { %5693 = sst [smem:[#allocation15_spill]] %s5662_s3 }
   0x5   :  { %5694 = sst [smem:[#allocation16_spill]] %s5663_s4 }
   0x6   :  { %5695 = sst [smem:[#allocation17_spill]] %s5664_s5 }
   0x7   :  { %5696 = sst [smem:[#allocation18_spill]] %s5665_s6 }
   0x8   :  { %5697 = sst [smem:[#allocation19_spill]] %s5666_s7 }
   0x9   :  { %31 = vsyncpa [#allocation4], 0 }
   0xa   :  { %32 = vsyncpa [#allocation7], 0 }
   0xb   :  { %33 = vsyncpa [#allocation5], 0  ;;  %s4865_s24 = smov [#allocation3]   ;;  %s4866_s5 = smov [#allocation6]  }
   0xc   :  { %s48_s25 = sshll.u32 %s4865_s24, 4  ;;  %s66_s1 = sshll.u32 %s4866_s5, 4  ;;  %s49_s25 = int_to_ptr.vmem [resolvable:$true] %s48_s25  ;;  %s67_s1 = int_to_ptr.vmem [resolvable:$true] %s66_s1 }
   0xd   :  { %s5698_s6 = sld [smem:[#allocation16_spill]] }
  0x13   :  { %s4793_s27 = scalar_lea.hbm %s5698_s6, 16 }
  0x14   :  { %p4794_p0 = scmp.ne.s32.totalorder %s5698_s6, %s4793_s27  ;;  %p4797_p1 = scmp.lt.u32.totalorder %s4793_s27, %s5698_s6 }
  0x16   :  { %p4799_p2 = pnand %p4797_p1, %p4794_p0 }
  0x18   :  { %4802 = shalt.err (!%p4799_p2)
}
  0x19   :  { %s4803_s3 = scalar_lea.vmem %s49_s25, 16  ;;  %s4807_s0 = scalar_lea.vmem %s49_s25, 32 }
  0x1a   :  { %p4804_p3 = scmp.ne.s32.totalorder %s49_s25, %s4803_s3  ;;  %p4808_p4 = scmp.lt.s32.totalorder %s49_s25, %s49_s25 }
  0x1b   :  { %p4809_p5 = scmp.lt.s32.totalorder %s4807_s0, %s4803_s3 }
  0x1d   :  { %p4810_p6 = por %p4809_p5, %p4808_p4 }
  0x1f   :  { %p4811_p7 = pnand %p4810_p6, %p4804_p3 }
  0x21   :  { %4814 = shalt.err (!%p4811_p7)
}
  0x22   :  { %51 = dma.hbm_to_vmem [thread:$0]  %s5698_s6, 16, %s49_s25, [#allocation4]  }
  0x23   :  { %s4815_s26 = scalar_lea.hbm %s5668_s9, 16 }
  0x24   :  { %p4816_p8 = scmp.ne.s32.totalorder %s5668_s9, %s4815_s26  ;;  %p4819_p9 = scmp.lt.u32.totalorder %s4815_s26, %s5668_s9 }
  0x26   :  { %p4821_p10 = pnand %p4819_p9, %p4816_p8 }
  0x28   :  { %4824 = shalt.err (!%p4821_p10)
}
  0x29   :  { %s4825_s29 = scalar_lea.vmem %s67_s1, 16  ;;  %s4829_s21 = scalar_lea.vmem %s67_s1, 32 }
  0x2a   :  { %p4826_p11 = scmp.ne.s32.totalorder %s67_s1, %s4825_s29  ;;  %p4830_p12 = scmp.lt.s32.totalorder %s67_s1, %s67_s1 }
  0x2b   :  { %p4831_p13 = scmp.lt.s32.totalorder %s4829_s21, %s4825_s29 }
  0x2d   :  { %p4832_p0 = por %p4831_p13, %p4830_p12 }
  0x2f   :  { %p4833_p1 = pnand %p4832_p0, %p4826_p11 }
  0x31   :  { %4836 = shalt.err (!%p4833_p1)
}
  0x32   :  { %69 = dma.hbm_to_vmem [thread:$0]  %s5668_s9, 16, %s67_s1, [#allocation7]  }
  0x33   :  { %4859 = dma.done.wait [#allocation4], 16  }
  0x34   :  { %4860 = vsyncadd [#allocation4], 4294967280 }
  0x35   :  { %4861 = dma.done.wait [#allocation7], 16  }
  0x36   :  { %4862 = vsyncadd [#allocation7], 4294967280  ;;  %v4867_v1 = vmov 0.0|0.0   ;;  %vm4868_vm0 = vmmov 0   ;;  %v4869_v2 = vmov 0.0   ;;  %s5699_s9 = sld [smem:[#allocation15_spill]] }
  0x37   :  { %4436 = vmatprep.subr.bf16.mxu1 %v4867_v1  ;;  %4026 = vmatprep.mubr.msk.f32.mxu1 %vm4868_vm0, %v4869_v2  ;;  %s5700_s7 = sld [smem:[#allocation14_spill]]  ;;  %s5701_s6 = sld [smem:[#allocation12_spill]]  ;;  %vm196_vm1 = vcmask 1041409   ;;  %vm198_vm2 = vcmask 130048   ;;  %v5075_v18 = vld [vmem:[#allocation3] ss:$0 sm:$0xff] }
  0x38   :  { %4451 = vmatprep.subr.bf16.mxu0 %v4867_v1  ;;  %4055 = vmatprep.mubr.msk.f32.mxu0 %vm4868_vm0, %v4869_v2  ;;  %s4871_s1 = smov 32   ;;  %s5702_s24 = sld [smem:[#allocation18_spill]]  ;;  %vm119_vm3 = vcmask 261120   ;;  %vm2901_vm4 = vcmask 1043456   ;;  %vm2897_vm5 = vcmask 31744   ;;  %vm3075_vm6 = vcmask 523264  }
  0x39   :  { %s5703_s25 = sld [smem:[#allocation17_spill]]  ;;  %s5704_s27 = sld [smem:[#allocation19_spill]]  ;;  %vm3319_vm7 = vcmask 25600   ;;  %vm3666_vm8 = vcmask 64512  }
  0x3a   :  { %s5705_s21 = sld [smem:[#allocation13_spill]] }
  0x3c   :  { %v105_v3 = vld [vmem:[%s5699_s9] sm:$0xff]  ;;  %v106_v4 = vld [vmem:[%s5699_s9 + $0x8] sm:$0xff]  ;;  %v107_v5 = vld [vmem:[%s5699_s9 + $0x10] sm:$0xff] }
  0x3d   :  { %v5035_v6 = vpack.c.bf16 %v106_v4, %v105_v3  ;;  %v108_v7 = vld [vmem:[%s5699_s9 + $0x18] sm:$0xff]  ;;  %v103_v9 = vld [vmem:[%s5700_s7] sm:$0xff]  ;;  %v104_v10 = vld [vmem:[%s5700_s7 + $0x8] sm:$0xff]  ;;  %s4870_s9 = smov 64  }
  0x3e   :  { %v5041_v8 = vpack.c.bf16 %v108_v7, %v107_v5  ;;  %v5053_v11 = vld [vmem:[%s5701_s6 + $0x8] sm:$0xff]  ;;  %v5056_v12 = vpack.c.bf16 %v104_v10, %v103_v9  ;;  %v5063_v14 = vld [vmem:[%s5701_s6] sm:$0xff]  ;;  %v116_v35 = vld [vmem:[%s5702_s24 + $0x10] sm:$0xff] }
  0x3f   :  { %4438 = vmatpush3.bf16.msra.mxu1 %v5035_v6  ;;  %v195_v13 = vrot.slane %v5053_v11, 7  ;;  %v114_v33 = vld [vmem:[%s5702_s24] sm:$0xff]  ;;  %v115_v34 = vld [vmem:[%s5702_s24 + $0x8] sm:$0xff]  ;;  %v117_v37 = vld [vmem:[%s5702_s24 + $0x18] sm:$0xff]  ;;  %v548_v50 = vrot.slane %v5063_v14, 1 }
  0x40   :  { %4439 = vmatprep.subr.bf16.mxu1 %v4867_v1  ;;  %v5092_v36 = vpack.c.bf16 %v115_v34, %v114_v33  ;;  %v110_v38 = vld [vmem:[%s5703_s25] sm:$0xff]  ;;  %v111_v39 = vld [vmem:[%s5703_s25 + $0x8] sm:$0xff]  ;;  %v112_v41 = vld [vmem:[%s5703_s25 + $0x10] sm:$0xff]  ;;  %v5112_v43 = vpack.c.bf16 %v117_v37, %v116_v35  ;;  %v892_v35 = vrot.slane %v5063_v14, 2  ;;  %v893_v37 = vrot.slane %v5053_v11, 1 }
  0x41   :  { %v197_v15 = vsel %vm196_vm1, %v195_v13, %v5063_v14  ;;  %v5103_v40 = vpack.c.bf16 %v111_v39, %v110_v38  ;;  %v113_v42 = vld [vmem:[%s5703_s25 + $0x18] sm:$0xff]  ;;  %v549_v52 = vsel %vm196_vm1, %v5053_v11, %v548_v50  ;;  %v5157_v53 = vld [vmem:[%s5704_s27] ss:$0 sm:$0xff] }
  0x42   :  { %v5116_v44 = vpack.c.bf16 %v113_v42, %v112_v41  ;;  %v894_v39 = vsel %vm196_vm1, %v893_v37, %v892_v35 }
  0x43   :  { %4441 = vmatpush3.bf16.msra.mxu1 %v5041_v8  ;;  %4453 = vmatpush3.bf16.msra.mxu0 %v5103_v40 }
  0x44   :  { %4442 = vmatprep.subr.bf16.mxu1 %v4867_v1  ;;  %4454 = vmatprep.subr.bf16.mxu0 %v4867_v1 }
  0x46   :  { %4027 = vmatmul.mubr.f32.vlgmr.msra.gmra.mrb[0].mxu1 %v4869_v2 }
  0x47   :  { %4444 = vmatpush3.bf16.msra.mxu1 %v5056_v12  ;;  %4033 = vmatprep.mubr.msk.f32.mxu1 %vm4868_vm0, %v4869_v2 }
  0x48   :  { %4445 = vmatprep.subr.bf16.mxu1 %v4867_v1  ;;  %4456 = vmatpush3.bf16.msra.mxu0 %v5116_v44 }
  0x49   :  { %4463 = vmatprep.subr.bf16.mxu0 %v4867_v1 }
  0x4a   :  { %4034 = vmatmul.mubr.msk.f32.vlgmr.msra.gmra.mrb[2].mxu1 %vm198_vm2, %v197_v15 }
  0x4b   :  { %4044 = vmatprep.mubr.msk.f32.mxu1 %vm4868_vm0, %v4869_v2  ;;  %4447 = vmatpush3.bf16.msra.mxu1 %v5092_v36 }
  0x4c   :  { %4448 = vmatprep.subr.bf16.mxu1 %v4867_v1 }
  0x4f   :  { %4450 = vmatpush3.bf16.msra.mxu1 %v5112_v43 }
  0x50   :  { %4457 = vmatprep.subr.bf16.mxu1 %v4867_v1 }
  0x52   :  { %4045 = vmatmul.mubr.f32.vlgmr.msra.gmra.mrb[4].mxu1 %v4869_v2 }
  0x53   :  { %4459 = vmatpush3.bf16.msra.mxu1 %v5035_v6  ;;  %4066 = vmatprep.mubr.msk.f32.mxu1 %vm4868_vm0, %v4869_v2 }
  0x54   :  { %4460 = vmatprep.subr.bf16.mxu1 %v4867_v1 }
  0x57   :  { %4462 = vmatpush3.bf16.msra.mxu1 %v5041_v8 }
  0x58   :  { %4472 = vmatprep.subr.bf16.mxu1 %v4867_v1 }
 0x119   :  { %v189_v16 = vpop.f32.mrb[0].mxu1 }
 0x11a   :  { %v4028_v17 = vpop.f32.mrb[1].mxu1 }
 0x11d   :  { %v267_v19 = vpop.f32.mrb[2].mxu1 }
 0x11e   :  { %v268_v20 = vadd.f32 %v267_v19, %v189_v16  ;;  %v4035_v21 = vpop.f32.mrb[3].mxu1 }
 0x120   :  { %v277_v22 = vadd.f32 %v5075_v18, %v268_v20 }
 0x122   :  { %4657 = vtanh.f32 %v277_v22  ;;  %v3764_v24 = vmul.f32 -1.442695, %v277_v22 }
 0x124   :  { %4659 = vpow2.f32 %v3764_v24 }
 0x125   :  { %v368_v48 = vpop.f32.mrb[4].mxu1 }
 0x126   :  { %v4046_v49 = vpop.f32.mrb[5].mxu1 }
 0x12c   :  { %v4658_v23 = vpop.eup %4657 }
 0x12d   :  { %287 = vrot.lane.b32.xlu0 %v4658_v23, %s4870_s9 }
 0x12e   :  { %v4660_v25 = vpop.eup %4659 }
 0x12f   :  { %v281_v26 = vadd.f32 1.0, %v4660_v25 }
 0x131   :  { %4661 = vrcp.f32 %v281_v26 }
 0x13b   :  { %v4662_v27 = vpop.eup %4661 }
 0x13c   :  { %v285_v30 = vmul.f32 0.0, %v4662_v27 }
 0x19f   :  { %v288_v28 = vpop.permute.xlu0 %287 }
 0x1a0   :  { %v290_v29 = vmul.f32 %v4662_v27, %v288_v28 }
 0x1a2   :  { %292 = vrot.lane.b32.xlu0 %v290_v29, %s4871_s1 }
 0x214   :  { %v293_v31 = vpop.permute.xlu0 %292 }
 0x215   :  { %v5080_v32 = vadd.f32 %v293_v31, %v285_v30 }
 0x217   :  { %4663 = vtanh.f32 %v5080_v32 }
 0x221   :  { %v4664_v45 = vpop.eup %4663 }
 0x222   :  { %298 = vrot.lane.b32.xlu1 %v4664_v45, %s4870_s9 }
 0x294   :  { %v299_v46 = vpop.permute.xlu1 %298 }
 0x295   :  { %v301_v47 = vmul.f32 %v4662_v27, %v299_v46 }
 0x297   :  { %373 = vrot.lane.b32.xlu1 %v301_v47, %s4871_s1 }
 0x309   :  { %v374_v51 = vpop.permute.xlu1 %373 }
 0x30a   :  { %4056 = vmatmul.mubr.msk.f32.vlgmr.msra.gmra.mrb[0].mxu0 %vm119_vm3, %v374_v51  ;;  %4067 = vmatmul.mubr.msk.f32.vlgmr.msra.gmra.mrb[6].mxu1 %vm119_vm3, %v374_v51 }
 0x30b   :  { %4465 = vmatpush3.bf16.msra.mxu0 %v5056_v12  ;;  %4073 = vmatprep.mubr.msk.f32.mxu0 %vm4868_vm0, %v4869_v2 }
 0x30c   :  { %4466 = vmatprep.subr.bf16.mxu0 %v4867_v1  ;;  %4474 = vmatpush3.bf16.msra.mxu1 %v5103_v40 }
 0x30d   :  { %4475 = vmatprep.subr.bf16.mxu1 %v4867_v1  ;;  %4095 = vmatprep.mubr.msk.f32.mxu1 %vm4868_vm0, %v4869_v2 }
 0x30e   :  { %4074 = vmatmul.mubr.msk.f32.vlgmr.msra.gmra.mrb[2].mxu0 %vm198_vm2, %v549_v52 }
 0x30f   :  { %4468 = vmatpush3.bf16.msra.mxu0 %v5092_v36  ;;  %4084 = vmatprep.mubr.msk.f32.mxu0 %vm4868_vm0, %v4869_v2 }
 0x310   :  { %4469 = vmatprep.subr.bf16.mxu0 %v4867_v1  ;;  %4477 = vmatpush3.bf16.msra.mxu1 %v5116_v44 }
 0x311   :  { %4484 = vmatprep.subr.bf16.mxu1 %v4867_v1 }
 0x313   :  { %4471 = vmatpush3.bf16.msra.mxu0 %v5112_v43 }
 0x314   :  { %4478 = vmatprep.subr.bf16.mxu0 %v4867_v1 }
 0x3dd   :  { %v443_v54 = vpop.f32.mrb[0].mxu0  ;;  %v544_v55 = vpop.f32.mrb[6].mxu1 }
 0x3de   :  { %v444_v56 = vadd.f32 %v443_v54, %v368_v48  ;;  %v4057_v57 = vpop.f32.mrb[1].mxu0  ;;  %v4068_v58 = vpop.f32.mrb[7].mxu1 }
 0x3e0   :  { %v453_v59 = vadd.f32 %v5157_v53, %v444_v56 }
 0x3e1   :  { %v618_v60 = vpop.f32.mrb[2].mxu0 }
 0x3e2   :  { %4665 = vtanh.f32 %v453_v59  ;;  %v619_v61 = vadd.f32 %v618_v60, %v544_v55  ;;  %v4075_v62 = vpop.f32.mrb[3].mxu0  ;;  %v3767_v4 = vmul.f32 -1.442695, %v453_v59 }
 0x3e4   :  { %v622_v63 = vadd.f32 %v5075_v18, %v619_v61 }
 0x3e6   :  { %4667 = vtanh.f32 %v622_v63  ;;  %v3770_v5 = vmul.f32 -1.442695, %v622_v63 }
 0x3e7   :  { %4669 = vpow2.f32 %v3767_v4 }
 0x3e8   :  { %4671 = vpow2.f32 %v3770_v5 }
 0x3ec   :  { %v4666_v0 = vpop.eup %4665 }
 0x3ed   :  { %463 = vrot.lane.b32.xlu0 %v4666_v0, %s4870_s9 }
 0x3f0   :  { %v4668_v3 = vpop.eup %4667 }
 0x3f1   :  { %632 = vrot.lane.b32.xlu1 %v4668_v3, %s4870_s9  ;;  %v4670_v7 = vpop.eup %4669 }
 0x3f2   :  { %v457_v9 = vadd.f32 1.0, %v4670_v7  ;;  %v4672_v10 = vpop.eup %4671 }
 0x3f3   :  { %v626_v13 = vadd.f32 1.0, %v4672_v10 }
 0x3f4   :  { %4673 = vrcp.f32 %v457_v9 }
 0x3f5   :  { %4675 = vrcp.f32 %v626_v13 }
 0x3fe   :  { %v4674_v15 = vpop.eup %4673 }
 0x3ff   :  { %v4676_v19 = vpop.eup %4675  ;;  %v461_v22 = vmul.f32 0.0, %v4674_v15 }
 0x400   :  { %v630_v25 = vmul.f32 %v4676_v19, %v5080_v32 }
 0x45f   :  { %v464_v16 = vpop.permute.xlu0 %463 }
 0x460   :  { %v466_v17 = vmul.f32 %v4674_v15, %v464_v16 }
 0x462   :  { %468 = vrot.lane.b32.xlu0 %v466_v17, %s4871_s1 }
 0x463   :  { %v633_v20 = vpop.permute.xlu1 %632 }
 0x464   :  { %v635_v21 = vmul.f32 %v4676_v19, %v633_v20 }
 0x466   :  { %637 = vrot.lane.b32.xlu1 %v635_v21, %s4871_s1 }
 0x4d4   :  { %v469_v23 = vpop.permute.xlu0 %468 }
 0x4d5   :  { %v5165_v24 = vadd.f32 %v469_v23, %v461_v22 }
 0x4d7   :  { %4677 = vtanh.f32 %v5165_v24 }
 0x4d8   :  { %v638_v26 = vpop.permute.xlu1 %637 }
 0x4d9   :  { %v5169_v27 = vadd.f32 %v638_v26, %v630_v25 }
 0x4db   :  { %4679 = vtanh.f32 %v5169_v27 }
 0x4e1   :  { %v4678_v28 = vpop.eup %4677 }
 0x4e2   :  { %474 = vrot.lane.b32.xlu0 %v4678_v28, %s4870_s9  ;;  %v1238_v28 = vrot.slane %v5053_v11, 2 }
 0x4e5   :  { %v4680_v29 = vpop.eup %4679 }
 0x4e6   :  { %643 = vrot.lane.b32.xlu1 %v4680_v29, %s4870_s9 }
 0x554   :  { %v475_v30 = vpop.permute.xlu0 %474 }
 0x555   :  { %v477_v31 = vmul.f32 %v4674_v15, %v475_v30 }
 0x557   :  { %648 = vrot.lane.b32.xlu0 %v477_v31, %s4871_s1 }
 0x558   :  { %v644_v33 = vpop.permute.xlu1 %643 }
 0x559   :  { %v646_v34 = vmul.f32 %v4676_v19, %v644_v33 }
 0x55b   :  { %723 = vrot.lane.b32.xlu1 %v646_v34, %s4871_s1 }
 0x5c9   :  { %v649_v32 = vpop.permute.xlu0 %648 }
 0x5ca   :  { %4085 = vmatmul.mubr.msk.f32.vlgmr.msra.gmra.mrb[4].mxu0 %vm119_vm3, %v649_v32 }
 0x5cb   :  { %4480 = vmatpush3.bf16.msra.mxu0 %v5035_v6  ;;  %4106 = vmatprep.mubr.msk.f32.mxu0 %vm4868_vm0, %v4869_v2 }
 0x5cc   :  { %4481 = vmatprep.subr.bf16.mxu0 %v4867_v1 }
 0x5cd   :  { %v724_v38 = vpop.permute.xlu1 %723 }
 0x5ce   :  { %4096 = vmatmul.mubr.msk.f32.vlgmr.msra.gmra.mrb[8].mxu1 %vm119_vm3, %v724_v38 }
 0x5cf   :  { %4483 = vmatpush3.bf16.msra.mxu0 %v5041_v8  ;;  %4486 = vmatpush3.bf16.msra.mxu1 %v5056_v12 }
 0x5d0   :  { %4113 = vmatprep.mubr.msk.f32.mxu1 %vm4868_vm0, %v4869_v2  ;;  %4487 = vmatprep.subr.bf16.mxu1 %v4867_v1 }
 0x5d1   :  { %4493 = vmatprep.subr.bf16.mxu0 %v4867_v1 }
 0x5d2   :  { %4107 = vmatmul.mubr.msk.f32.vlgmr.msra.gmra.mrb[6].mxu0 %vm119_vm3, %v724_v38  ;;  %4114 = vmatmul.mubr.msk.f32.vlgmr.msra.gmra.mrb[10].mxu1 %vm198_vm2, %v894_v39 }
 0x5d3   :  { %4489 = vmatpush3.bf16.msra.mxu1 %v5092_v36  ;;  %4495 = vmatpush3.bf16.msra.mxu0 %v5103_v40 }
 0x5d4   :  { %4490 = vmatprep.subr.bf16.mxu1 %v4867_v1  ;;  %4124 = vmatprep.mubr.msk.f32.mxu1 %vm4868_vm0, %v4869_v2 }
 0x5d5   :  { %4496 = vmatprep.subr.bf16.mxu0 %v4867_v1  ;;  %4135 = vmatprep.mubr.msk.f32.mxu0 %vm4868_vm0, %v4869_v2 }
 0x5d7   :  { %4492 = vmatpush3.bf16.msra.mxu1 %v5112_v43  ;;  %4498 = vmatpush3.bf16.msra.mxu0 %v5116_v44 }
 0x5d8   :  { %4499 = vmatprep.subr.bf16.mxu1 %v4867_v1  ;;  %4505 = vmatprep.subr.bf16.mxu0 %v4867_v1 }
 0x69d   :  { %v718_v41 = vpop.f32.mrb[4].mxu0 }
 0x69e   :  { %v4086_v42 = vpop.f32.mrb[5].mxu0 }
 0x6a1   :  { %v793_v45 = vpop.f32.mrb[8].mxu1 }
 0x6a2   :  { %v794_v46 = vadd.f32 %v793_v45, %v718_v41  ;;  %v4097_v47 = vpop.f32.mrb[9].mxu1 }
 0x6a4   :  { %v797_v48 = vadd.f32 %v5157_v53, %v794_v46 }
 0x6a5   :  { %v888_v49 = vpop.f32.mrb[6].mxu0  ;;  %v963_v50 = vpop.f32.mrb[10].mxu1 }
 0x6a6   :  { %4681 = vtanh.f32 %v797_v48  ;;  %v4108_v51 = vpop.f32.mrb[7].mxu0  ;;  %v964_v52 = vadd.f32 %v963_v50, %v888_v49  ;;  %v4115_v54 = vpop.f32.mrb[11].mxu1  ;;  %v3773_v58 = vmul.f32 -1.442695, %v797_v48 }
 0x6a8   :  { %v967_v55 = vadd.f32 %v5075_v18, %v964_v52 }
 0x6aa   :  { %4683 = vtanh.f32 %v967_v55  ;;  %v3776_v59 = vmul.f32 -1.442695, %v967_v55 }
 0x6ab   :  { %4685 = vpow2.f32 %v3773_v58 }
 0x6ac   :  { %4687 = vpow2.f32 %v3776_v59 }
 0x6b0   :  { %v4682_v56 = vpop.eup %4681 }
 0x6b1   :  { %807 = vrot.lane.b32.xlu0 %v4682_v56, %s4870_s9 }
 0x6b4   :  { %v4684_v57 = vpop.eup %4683 }
 0x6b5   :  { %977 = vrot.lane.b32.xlu1 %v4684_v57, %s4870_s9  ;;  %v4686_v60 = vpop.eup %4685 }
 0x6b6   :  { %v801_v61 = vadd.f32 1.0, %v4686_v60  ;;  %v4688_v62 = vpop.eup %4687 }
 0x6b7   :  { %v971_v63 = vadd.f32 1.0, %v4688_v62 }
 0x6b8   :  { %4689 = vrcp.f32 %v801_v61 }
 0x6b9   :  { %4691 = vrcp.f32 %v971_v63 }
 0x6c2   :  { %v4690_v0 = vpop.eup %4689 }
 0x6c3   :  { %v4692_v5 = vpop.eup %4691  ;;  %v805_v10 = vmul.f32 %v4690_v0, %v5165_v24 }
 0x6c4   :  { %v975_v16 = vmul.f32 %v4692_v5, %v5169_v27  ;;  %v1237_v27 = vrot.slane %v5063_v14, 3 }
 0x6c6   :  { %v1239_v30 = vsel %vm196_vm1, %v1238_v28, %v1237_v27 }
 0x723   :  { %v808_v3 = vpop.permute.xlu0 %807 }
 0x724   :  { %v810_v4 = vmul.f32 %v4690_v0, %v808_v3 }
 0x726   :  { %812 = vrot.lane.b32.xlu0 %v810_v4, %s4871_s1 }
 0x727   :  { %v978_v7 = vpop.permute.xlu1 %977 }
 0x728   :  { %v980_v9 = vmul.f32 %v4692_v5, %v978_v7 }
 0x72a   :  { %982 = vrot.lane.b32.xlu1 %v980_v9, %s4871_s1 }
 0x798   :  { %v813_v13 = vpop.permute.xlu0 %812 }
 0x799   :  { %v5212_v15 = vadd.f32 %v813_v13, %v805_v10 }
 0x79b   :  { %4693 = vtanh.f32 %v5212_v15 }
 0x79c   :  { %v983_v17 = vpop.permute.xlu1 %982 }
 0x79d   :  { %v5216_v19 = vadd.f32 %v983_v17, %v975_v16 }
 0x79f   :  { %4695 = vtanh.f32 %v5216_v19 }
 0x7a5   :  { %v4694_v20 = vpop.eup %4693 }
 0x7a6   :  { %818 = vrot.lane.b32.xlu0 %v4694_v20, %s4870_s9  ;;  %v1583_v20 = vrot.slane %v5053_v11, 3 }
 0x7a9   :  { %v4696_v21 = vpop.eup %4695 }
 0x7aa   :  { %988 = vrot.lane.b32.xlu1 %v4696_v21, %s4870_s9 }
 0x818   :  { %v819_v22 = vpop.permute.xlu0 %818 }
 0x819   :  { %v821_v23 = vmul.f32 %v4690_v0, %v819_v22 }
 0x81b   :  { %993 = vrot.lane.b32.xlu0 %v821_v23, %s4871_s1 }
 0x81c   :  { %v989_v24 = vpop.permute.xlu1 %988 }
 0x81d   :  { %v991_v25 = vmul.f32 %v4692_v5, %v989_v24 }
 0x81f   :  { %1068 = vrot.lane.b32.xlu1 %v991_v25, %s4871_s1 }
 0x88d   :  { %v994_v26 = vpop.permute.xlu0 %993 }
 0x88e   :  { %4125 = vmatmul.mubr.msk.f32.vlgmr.msra.gmra.mrb[12].mxu1 %vm119_vm3, %v994_v26 }
 0x88f   :  { %4501 = vmatpush3.bf16.msra.mxu1 %v5035_v6  ;;  %4146 = vmatprep.mubr.msk.f32.mxu1 %vm4868_vm0, %v4869_v2 }
 0x890   :  { %4502 = vmatprep.subr.bf16.mxu1 %v4867_v1 }
 0x891   :  { %v1069_v29 = vpop.permute.xlu1 %1068 }
 0x892   :  { %4136 = vmatmul.mubr.msk.f32.vlgmr.msra.gmra.mrb[8].mxu0 %vm119_vm3, %v1069_v29 }
 0x893   :  { %4504 = vmatpush3.bf16.msra.mxu1 %v5041_v8  ;;  %4507 = vmatpush3.bf16.msra.mxu0 %v5056_v12 }
 0x894   :  { %4153 = vmatprep.mubr.msk.f32.mxu0 %vm4868_vm0, %v4869_v2  ;;  %4508 = vmatprep.subr.bf16.mxu0 %v4867_v1 }
 0x895   :  { %4514 = vmatprep.subr.bf16.mxu1 %v4867_v1 }
 0x896   :  { %4147 = vmatmul.mubr.msk.f32.vlgmr.msra.gmra.mrb[14].mxu1 %vm119_vm3, %v1069_v29  ;;  %4154 = vmatmul.mubr.msk.f32.vlgmr.msra.gmra.mrb[10].mxu0 %vm198_vm2, %v1239_v30 }
 0x897   :  { %4510 = vmatpush3.bf16.msra.mxu0 %v5092_v36  ;;  %4516 = vmatpush3.bf16.msra.mxu1 %v5103_v40 }
 0x898   :  { %4511 = vmatprep.subr.bf16.mxu0 %v4867_v1  ;;  %4164 = vmatprep.mubr.msk.f32.mxu0 %vm4868_vm0, %v4869_v2 }
 0x899   :  { %4517 = vmatprep.subr.bf16.mxu1 %v4867_v1  ;;  %4175 = vmatprep.mubr.msk.f32.mxu1 %vm4868_vm0, %v4869_v2 }
 0x89b   :  { %4513 = vmatpush3.bf16.msra.mxu0 %v5112_v43  ;;  %4519 = vmatpush3.bf16.msra.mxu1 %v5116_v44 }
 0x89c   :  { %4520 = vmatprep.subr.bf16.mxu0 %v4867_v1  ;;  %4526 = vmatprep.subr.bf16.mxu1 %v4867_v1 }
 0x961   :  { %v1063_v31 = vpop.f32.mrb[12].mxu1 }
 0x962   :  { %v4126_v33 = vpop.f32.mrb[13].mxu1 }
 0x965   :  { %v1138_v34 = vpop.f32.mrb[8].mxu0 }
 0x966   :  { %v1139_v32 = vadd.f32 %v1138_v34, %v1063_v31  ;;  %v4137_v35 = vpop.f32.mrb[9].mxu0 }
 0x968   :  { %v1142_v37 = vadd.f32 %v5157_v53, %v1139_v32 }
 0x969   :  { %v1233_v38 = vpop.f32.mrb[14].mxu1  ;;  %v1308_v39 = vpop.f32.mrb[10].mxu0 }
 0x96a   :  { %4697 = vtanh.f32 %v1142_v37  ;;  %v4148_v41 = vpop.f32.mrb[15].mxu1  ;;  %v1309_v42 = vadd.f32 %v1308_v39, %v1233_v38  ;;  %v4155_v45 = vpop.f32.mrb[11].mxu0  ;;  %v3779_v49 = vmul.f32 -1.442695, %v1142_v37 }
 0x96c   :  { %v1312_v46 = vadd.f32 %v5075_v18, %v1309_v42 }
 0x96e   :  { %4699 = vtanh.f32 %v1312_v46  ;;  %v3782_v50 = vmul.f32 -1.442695, %v1312_v46 }
 0x96f   :  { %4701 = vpow2.f32 %v3779_v49 }
 0x970   :  { %4703 = vpow2.f32 %v3782_v50 }
 0x974   :  { %v4698_v47 = vpop.eup %4697 }
 0x975   :  { %1152 = vrot.lane.b32.xlu0 %v4698_v47, %s4870_s9 }
 0x978   :  { %v4700_v48 = vpop.eup %4699 }
 0x979   :  { %1322 = vrot.lane.b32.xlu1 %v4700_v48, %s4870_s9  ;;  %v4702_v51 = vpop.eup %4701 }
 0x97a   :  { %v1146_v52 = vadd.f32 1.0, %v4702_v51  ;;  %v4704_v54 = vpop.eup %4703 }
 0x97b   :  { %v1316_v55 = vadd.f32 1.0, %v4704_v54 }
 0x97c   :  { %4705 = vrcp.f32 %v1146_v52 }
 0x97d   :  { %4707 = vrcp.f32 %v1316_v55 }
 0x986   :  { %v4706_v56 = vpop.eup %4705 }
 0x987   :  { %v4708_v59 = vpop.eup %4707  ;;  %v1150_v62 = vmul.f32 %v4706_v56, %v5212_v15 }
 0x988   :  { %v1320_v3 = vmul.f32 %v4708_v59, %v5216_v19  ;;  %v1582_v19 = vrot.slane %v5063_v14, 4 }
 0x98a   :  { %v1584_v22 = vsel %vm196_vm1, %v1583_v20, %v1582_v19 }
 0x9e7   :  { %v1153_v57 = vpop.permute.xlu0 %1152 }
 0x9e8   :  { %v1155_v58 = vmul.f32 %v4706_v56, %v1153_v57 }
 0x9ea   :  { %1157 = vrot.lane.b32.xlu0 %v1155_v58, %s4871_s1 }
 0x9eb   :  { %v1323_v60 = vpop.permute.xlu1 %1322 }
 0x9ec   :  { %v1325_v61 = vmul.f32 %v4708_v59, %v1323_v60 }
 0x9ee   :  { %1327 = vrot.lane.b32.xlu1 %v1325_v61, %s4871_s1 }
 0xa5c   :  { %v1158_v63 = vpop.permute.xlu0 %1157 }
 0xa5d   :  { %v5259_v0 = vadd.f32 %v1158_v63, %v1150_v62 }
 0xa5f   :  { %4709 = vtanh.f32 %v5259_v0 }
 0xa60   :  { %v1328_v4 = vpop.permute.xlu1 %1327 }
 0xa61   :  { %v5263_v5 = vadd.f32 %v1328_v4, %v1320_v3 }
 0xa63   :  { %4711 = vtanh.f32 %v5263_v5 }
 0xa69   :  { %v4710_v7 = vpop.eup %4709 }
 0xa6a   :  { %1163 = vrot.lane.b32.xlu0 %v4710_v7, %s4870_s9  ;;  %v1928_v7 = vrot.slane %v5053_v11, 4 }
 0xa6d   :  { %v4712_v9 = vpop.eup %4711 }
 0xa6e   :  { %1333 = vrot.lane.b32.xlu1 %v4712_v9, %s4870_s9 }
 0xadc   :  { %v1164_v10 = vpop.permute.xlu0 %1163 }
 0xadd   :  { %v1166_v13 = vmul.f32 %v4706_v56, %v1164_v10 }
 0xadf   :  { %1338 = vrot.lane.b32.xlu0 %v1166_v13, %s4871_s1 }
 0xae0   :  { %v1334_v15 = vpop.permute.xlu1 %1333 }
 0xae1   :  { %v1336_v16 = vmul.f32 %v4708_v59, %v1334_v15 }
 0xae3   :  { %1413 = vrot.lane.b32.xlu1 %v1336_v16, %s4871_s1 }
 0xb51   :  { %v1339_v17 = vpop.permute.xlu0 %1338 }
 0xb52   :  { %4165 = vmatmul.mubr.msk.f32.vlgmr.msra.gmra.mrb[12].mxu0 %vm119_vm3, %v1339_v17 }
 0xb53   :  { %4522 = vmatpush3.bf16.msra.mxu0 %v5035_v6  ;;  %4186 = vmatprep.mubr.msk.f32.mxu0 %vm4868_vm0, %v4869_v2 }
 0xb54   :  { %4523 = vmatprep.subr.bf16.mxu0 %v4867_v1 }
 0xb55   :  { %v1414_v21 = vpop.permute.xlu1 %1413 }
 0xb56   :  { %4176 = vmatmul.mubr.msk.f32.vlgmr.msra.gmra.mrb[16].mxu1 %vm119_vm3, %v1414_v21 }
 0xb57   :  { %4525 = vmatpush3.bf16.msra.mxu0 %v5041_v8  ;;  %4528 = vmatpush3.bf16.msra.mxu1 %v5056_v12 }
 0xb58   :  { %4193 = vmatprep.mubr.msk.f32.mxu1 %vm4868_vm0, %v4869_v2  ;;  %4529 = vmatprep.subr.bf16.mxu1 %v4867_v1 }
 0xb59   :  { %4535 = vmatprep.subr.bf16.mxu0 %v4867_v1 }
 0xb5a   :  { %4187 = vmatmul.mubr.msk.f32.vlgmr.msra.gmra.mrb[14].mxu0 %vm119_vm3, %v1414_v21  ;;  %4194 = vmatmul.mubr.msk.f32.vlgmr.msra.gmra.mrb[18].mxu1 %vm198_vm2, %v1584_v22 }
 0xb5b   :  { %4531 = vmatpush3.bf16.msra.mxu1 %v5092_v36  ;;  %4537 = vmatpush3.bf16.msra.mxu0 %v5103_v40 }
 0xb5c   :  { %4532 = vmatprep.subr.bf16.mxu1 %v4867_v1  ;;  %4204 = vmatprep.mubr.msk.f32.mxu1 %vm4868_vm0, %v4869_v2 }
 0xb5d   :  { %4538 = vmatprep.subr.bf16.mxu0 %v4867_v1  ;;  %4215 = vmatprep.mubr.msk.f32.mxu0 %vm4868_vm0, %v4869_v2 }
 0xb5f   :  { %4534 = vmatpush3.bf16.msra.mxu1 %v5112_v43  ;;  %4540 = vmatpush3.bf16.msra.mxu0 %v5116_v44 }
 0xb60   :  { %4541 = vmatprep.subr.bf16.mxu1 %v4867_v1  ;;  %4547 = vmatprep.subr.bf16.mxu0 %v4867_v1 }
 0xc25   :  { %v1408_v23 = vpop.f32.mrb[12].mxu0 }
 0xc26   :  { %v4166_v24 = vpop.f32.mrb[13].mxu0 }
 0xc29   :  { %v1483_v25 = vpop.f32.mrb[16].mxu1 }
 0xc2a   :  { %v1484_v26 = vadd.f32 %v1483_v25, %v1408_v23  ;;  %v4177_v27 = vpop.f32.mrb[17].mxu1 }
 0xc2c   :  { %v1487_v28 = vadd.f32 %v5157_v53, %v1484_v26 }
 0xc2d   :  { %v1578_v29 = vpop.f32.mrb[14].mxu0  ;;  %v1653_v30 = vpop.f32.mrb[18].mxu1 }
 0xc2e   :  { %4713 = vtanh.f32 %v1487_v28  ;;  %v4188_v31 = vpop.f32.mrb[15].mxu0  ;;  %v1654_v33 = vadd.f32 %v1653_v30, %v1578_v29  ;;  %v4195_v34 = vpop.f32.mrb[19].mxu1  ;;  %v3785_v38 = vmul.f32 -1.442695, %v1487_v28 }
 0xc30   :  { %v1657_v32 = vadd.f32 %v5075_v18, %v1654_v33 }
 0xc32   :  { %4715 = vtanh.f32 %v1657_v32  ;;  %v3788_v39 = vmul.f32 -1.442695, %v1657_v32 }
 0xc33   :  { %4717 = vpow2.f32 %v3785_v38 }
 0xc34   :  { %4719 = vpow2.f32 %v3788_v39 }
 0xc38   :  { %v4714_v35 = vpop.eup %4713 }
 0xc39   :  { %1497 = vrot.lane.b32.xlu0 %v4714_v35, %s4870_s9 }
 0xc3c   :  { %v4716_v37 = vpop.eup %4715 }
 0xc3d   :  { %1667 = vrot.lane.b32.xlu1 %v4716_v37, %s4870_s9  ;;  %v4718_v41 = vpop.eup %4717 }
 0xc3e   :  { %v1491_v42 = vadd.f32 1.0, %v4718_v41  ;;  %v4720_v45 = vpop.eup %4719 }
 0xc3f   :  { %v1661_v46 = vadd.f32 1.0, %v4720_v45 }
 0xc40   :  { %4721 = vrcp.f32 %v1491_v42 }
 0xc41   :  { %4723 = vrcp.f32 %v1661_v46 }
 0xc4a   :  { %v4722_v47 = vpop.eup %4721 }
 0xc4b   :  { %v4724_v50 = vpop.eup %4723  ;;  %v1495_v54 = vmul.f32 %v4722_v47, %v5259_v0 }
 0xc4c   :  { %v1665_v57 = vmul.f32 %v4724_v50, %v5263_v5  ;;  %v1927_v5 = vrot.slane %v5063_v14, 5 }
 0xc4e   :  { %v1929_v10 = vsel %vm196_vm1, %v1928_v7, %v1927_v5 }
 0xcab   :  { %v1498_v48 = vpop.permute.xlu0 %1497 }
 0xcac   :  { %v1500_v49 = vmul.f32 %v4722_v47, %v1498_v48 }
 0xcae   :  { %1502 = vrot.lane.b32.xlu0 %v1500_v49, %s4871_s1 }
 0xcaf   :  { %v1668_v51 = vpop.permute.xlu1 %1667 }
 0xcb0   :  { %v1670_v52 = vmul.f32 %v4724_v50, %v1668_v51 }
 0xcb2   :  { %1672 = vrot.lane.b32.xlu1 %v1670_v52, %s4871_s1 }
 0xd20   :  { %v1503_v55 = vpop.permute.xlu0 %1502 }
 0xd21   :  { %v5306_v56 = vadd.f32 %v1503_v55, %v1495_v54 }
 0xd23   :  { %4725 = vtanh.f32 %v5306_v56 }
 0xd24   :  { %v1673_v58 = vpop.permute.xlu1 %1672 }
 0xd25   :  { %v5310_v59 = vadd.f32 %v1673_v58, %v1665_v57 }
 0xd27   :  { %4727 = vtanh.f32 %v5310_v59 }
 0xd2d   :  { %v4726_v60 = vpop.eup %4725 }
 0xd2e   :  { %1508 = vrot.lane.b32.xlu0 %v4726_v60, %s4870_s9  ;;  %v2273_v60 = vrot.slane %v5053_v11, 5 }
 0xd31   :  { %v4728_v61 = vpop.eup %4727 }
 0xd32   :  { %1678 = vrot.lane.b32.xlu1 %v4728_v61, %s4870_s9 }
 0xda0   :  { %v1509_v62 = vpop.permute.xlu0 %1508 }
 0xda1   :  { %v1511_v63 = vmul.f32 %v4722_v47, %v1509_v62 }
 0xda3   :  { %1683 = vrot.lane.b32.xlu0 %v1511_v63, %s4871_s1 }
 0xda4   :  { %v1679_v0 = vpop.permute.xlu1 %1678 }
 0xda5   :  { %v1681_v3 = vmul.f32 %v4724_v50, %v1679_v0 }
 0xda7   :  { %1758 = vrot.lane.b32.xlu1 %v1681_v3, %s4871_s1 }
 0xe15   :  { %v1684_v4 = vpop.permute.xlu0 %1683 }
 0xe16   :  { %4205 = vmatmul.mubr.msk.f32.vlgmr.msra.gmra.mrb[20].mxu1 %vm119_vm3, %v1684_v4 }
 0xe17   :  { %4543 = vmatpush3.bf16.msra.mxu1 %v5035_v6  ;;  %4226 = vmatprep.mubr.msk.f32.mxu1 %vm4868_vm0, %v4869_v2 }
 0xe18   :  { %4544 = vmatprep.subr.bf16.mxu1 %v4867_v1 }
 0xe19   :  { %v1759_v9 = vpop.permute.xlu1 %1758 }
 0xe1a   :  { %4216 = vmatmul.mubr.msk.f32.vlgmr.msra.gmra.mrb[16].mxu0 %vm119_vm3, %v1759_v9 }
 0xe1b   :  { %4546 = vmatpush3.bf16.msra.mxu1 %v5041_v8  ;;  %4549 = vmatpush3.bf16.msra.mxu0 %v5056_v12 }
 0xe1c   :  { %4233 = vmatprep.mubr.msk.f32.mxu0 %vm4868_vm0, %v4869_v2  ;;  %4550 = vmatprep.subr.bf16.mxu0 %v4867_v1 }
 0xe1d   :  { %4556 = vmatprep.subr.bf16.mxu1 %v4867_v1 }
 0xe1e   :  { %4227 = vmatmul.mubr.msk.f32.vlgmr.msra.gmra.mrb[22].mxu1 %vm119_vm3, %v1759_v9  ;;  %4234 = vmatmul.mubr.msk.f32.vlgmr.msra.gmra.mrb[18].mxu0 %vm198_vm2, %v1929_v10 }
 0xe1f   :  { %4552 = vmatpush3.bf16.msra.mxu0 %v5092_v36  ;;  %4558 = vmatpush3.bf16.msra.mxu1 %v5103_v40 }
 0xe20   :  { %4553 = vmatprep.subr.bf16.mxu0 %v4867_v1  ;;  %4244 = vmatprep.mubr.msk.f32.mxu0 %vm4868_vm0, %v4869_v2 }
 0xe21   :  { %4559 = vmatprep.subr.bf16.mxu1 %v4867_v1  ;;  %4255 = vmatprep.mubr.msk.f32.mxu1 %vm4868_vm0, %v4869_v2 }
 0xe23   :  { %4555 = vmatpush3.bf16.msra.mxu0 %v5112_v43  ;;  %4561 = vmatpush3.bf16.msra.mxu1 %v5116_v44 }
 0xe24   :  { %4562 = vmatprep.subr.bf16.mxu0 %v4867_v1  ;;  %4568 = vmatprep.subr.bf16.mxu1 %v4867_v1 }
 0xee9   :  { %v1753_v13 = vpop.f32.mrb[20].mxu1 }
 0xeea   :  { %v4206_v15 = vpop.f32.mrb[21].mxu1 }
 0xeed   :  { %v1828_v16 = vpop.f32.mrb[16].mxu0 }
 0xeee   :  { %v1829_v17 = vadd.f32 %v1828_v16, %v1753_v13  ;;  %v4217_v19 = vpop.f32.mrb[17].mxu0 }
 0xef0   :  { %v1832_v20 = vadd.f32 %v5157_v53, %v1829_v17 }
 0xef1   :  { %v1923_v21 = vpop.f32.mrb[22].mxu1  ;;  %v1998_v22 = vpop.f32.mrb[18].mxu0 }
 0xef2   :  { %4729 = vtanh.f32 %v1832_v20  ;;  %v4228_v23 = vpop.f32.mrb[23].mxu1  ;;  %v1999_v24 = vadd.f32 %v1998_v22, %v1923_v21  ;;  %v4235_v25 = vpop.f32.mrb[19].mxu0  ;;  %v3791_v29 = vmul.f32 -1.442695, %v1832_v20 }
 0xef4   :  { %v2002_v26 = vadd.f32 %v5075_v18, %v1999_v24 }
 0xef6   :  { %4731 = vtanh.f32 %v2002_v26  ;;  %v3794_v30 = vmul.f32 -1.442695, %v2002_v26 }
 0xef7   :  { %4733 = vpow2.f32 %v3791_v29 }
 0xef8   :  { %4735 = vpow2.f32 %v3794_v30 }
 0xefc   :  { %v4730_v27 = vpop.eup %4729 }
 0xefd   :  { %1842 = vrot.lane.b32.xlu0 %v4730_v27, %s4870_s9 }
 0xf00   :  { %v4732_v28 = vpop.eup %4731 }
 0xf01   :  { %2012 = vrot.lane.b32.xlu1 %v4732_v28, %s4870_s9  ;;  %v4734_v31 = vpop.eup %4733 }
 0xf02   :  { %v1836_v33 = vadd.f32 1.0, %v4734_v31  ;;  %v4736_v34 = vpop.eup %4735 }
 0xf03   :  { %v2006_v32 = vadd.f32 1.0, %v4736_v34 }
 0xf04   :  { %4737 = vrcp.f32 %v1836_v33 }
 0xf05   :  { %4739 = vrcp.f32 %v2006_v32 }
 0xf0e   :  { %v4738_v35 = vpop.eup %4737 }
 0xf0f   :  { %v4740_v39 = vpop.eup %4739  ;;  %v1840_v45 = vmul.f32 %v4738_v35, %v5306_v56 }
 0xf10   :  { %v2010_v48 = vmul.f32 %v4740_v39, %v5310_v59  ;;  %v2272_v59 = vrot.slane %v5063_v14, 6 }
 0xf12   :  { %v2274_v62 = vsel %vm196_vm1, %v2273_v60, %v2272_v59 }
 0xf6f   :  { %v1843_v37 = vpop.permute.xlu0 %1842 }
 0xf70   :  { %v1845_v38 = vmul.f32 %v4738_v35, %v1843_v37 }
 0xf72   :  { %1847 = vrot.lane.b32.xlu0 %v1845_v38, %s4871_s1 }
 0xf73   :  { %v2013_v41 = vpop.permute.xlu1 %2012 }
 0xf74   :  { %v2015_v42 = vmul.f32 %v4740_v39, %v2013_v41 }
 0xf76   :  { %2017 = vrot.lane.b32.xlu1 %v2015_v42, %s4871_s1 }
 0xfe4   :  { %v1848_v46 = vpop.permute.xlu0 %1847 }
 0xfe5   :  { %v5353_v47 = vadd.f32 %v1848_v46, %v1840_v45 }
 0xfe7   :  { %4741 = vtanh.f32 %v5353_v47 }
 0xfe8   :  { %v2018_v49 = vpop.permute.xlu1 %2017 }
 0xfe9   :  { %v5357_v50 = vadd.f32 %v2018_v49, %v2010_v48  ;;  %v4790_v49 = vld [vmem:[%s5701_s6 + $0x8] sm:$0xff] }
 0xfeb   :  { %4743 = vtanh.f32 %v5357_v50 }
 0xff1   :  { %v4742_v51 = vpop.eup %4741 }
 0xff2   :  { %1853 = vrot.lane.b32.xlu0 %v4742_v51, %s4870_s9 }
 0xff5   :  { %v4744_v52 = vpop.eup %4743 }
 0xff6   :  { %2023 = vrot.lane.b32.xlu1 %v4744_v52, %s4870_s9 }
0x1064   :  { %v1854_v54 = vpop.permute.xlu0 %1853 }
0x1065   :  { %v1856_v55 = vmul.f32 %v4738_v35, %v1854_v54 }
0x1067   :  { %2028 = vrot.lane.b32.xlu0 %v1856_v55, %s4871_s1 }
0x1068   :  { %v2024_v56 = vpop.permute.xlu1 %2023 }
0x1069   :  { %v2026_v57 = vmul.f32 %v4740_v39, %v2024_v56 }
0x106b   :  { %2103 = vrot.lane.b32.xlu1 %v2026_v57, %s4871_s1 }
0x10d9   :  { %v2029_v58 = vpop.permute.xlu0 %2028 }
0x10da   :  { %4245 = vmatmul.mubr.msk.f32.vlgmr.msra.gmra.mrb[20].mxu0 %vm119_vm3, %v2029_v58 }
0x10db   :  { %4564 = vmatpush3.bf16.msra.mxu0 %v5035_v6  ;;  %4266 = vmatprep.mubr.msk.f32.mxu0 %vm4868_vm0, %v4869_v2 }
0x10dc   :  { %4565 = vmatprep.subr.bf16.mxu0 %v4867_v1 }
0x10dd   :  { %v2104_v61 = vpop.permute.xlu1 %2103 }
0x10de   :  { %4256 = vmatmul.mubr.msk.f32.vlgmr.msra.gmra.mrb[24].mxu1 %vm119_vm3, %v2104_v61 }
0x10df   :  { %4567 = vmatpush3.bf16.msra.mxu0 %v5041_v8  ;;  %4570 = vmatpush3.bf16.msra.mxu1 %v5056_v12 }
0x10e0   :  { %4273 = vmatprep.mubr.msk.f32.mxu1 %vm4868_vm0, %v4869_v2  ;;  %4571 = vmatprep.subr.bf16.mxu1 %v4867_v1 }
0x10e1   :  { %4577 = vmatprep.subr.bf16.mxu0 %v4867_v1 }
0x10e2   :  { %4267 = vmatmul.mubr.msk.f32.vlgmr.msra.gmra.mrb[22].mxu0 %vm119_vm3, %v2104_v61  ;;  %4274 = vmatmul.mubr.msk.f32.vlgmr.msra.gmra.mrb[26].mxu1 %vm198_vm2, %v2274_v62 }
0x10e3   :  { %4573 = vmatpush3.bf16.msra.mxu1 %v5092_v36  ;;  %4579 = vmatpush3.bf16.msra.mxu0 %v5103_v40 }
0x10e4   :  { %4574 = vmatprep.subr.bf16.mxu1 %v4867_v1  ;;  %4284 = vmatprep.mubr.msk.f32.mxu1 %vm4868_vm0, %v4869_v2 }
0x10e5   :  { %4580 = vmatprep.subr.bf16.mxu0 %v4867_v1  ;;  %4295 = vmatprep.mubr.msk.f32.mxu0 %vm4868_vm0, %v4869_v2 }
0x10e7   :  { %4576 = vmatpush3.bf16.msra.mxu1 %v5112_v43  ;;  %4582 = vmatpush3.bf16.msra.mxu0 %v5116_v44 }
0x10e8   :  { %4583 = vmatprep.subr.bf16.mxu1 %v4867_v1  ;;  %4589 = vmatprep.subr.bf16.mxu0 %v4867_v1 }
0x11ad   :  { %v2098_v11 = vpop.f32.mrb[20].mxu0 }
0x11ae   :  { %v4246_v14 = vpop.f32.mrb[21].mxu0 }
0x11b1   :  { %v2173_v63 = vpop.f32.mrb[24].mxu1 }
0x11b2   :  { %v2174_v0 = vadd.f32 %v2173_v63, %v2098_v11  ;;  %v4257_v3 = vpop.f32.mrb[25].mxu1 }
0x11b4   :  { %v2177_v4 = vadd.f32 %v5157_v53, %v2174_v0 }
0x11b5   :  { %v2268_v5 = vpop.f32.mrb[22].mxu0  ;;  %v2343_v7 = vpop.f32.mrb[26].mxu1 }
0x11b6   :  { %4745 = vtanh.f32 %v2177_v4  ;;  %v4268_v9 = vpop.f32.mrb[23].mxu0  ;;  %v2344_v10 = vadd.f32 %v2343_v7, %v2268_v5  ;;  %v4275_v13 = vpop.f32.mrb[27].mxu1  ;;  %v3797_v19 = vmul.f32 -1.442695, %v2177_v4 }
0x11b8   :  { %v2347_v15 = vadd.f32 %v5075_v18, %v2344_v10 }
0x11ba   :  { %4747 = vtanh.f32 %v2347_v15  ;;  %v3800_v20 = vmul.f32 -1.442695, %v2347_v15 }
0x11bb   :  { %4749 = vpow2.f32 %v3797_v19 }
0x11bc   :  { %4751 = vpow2.f32 %v3800_v20 }
0x11c0   :  { %v4746_v16 = vpop.eup %4745 }
0x11c1   :  { %2187 = vrot.lane.b32.xlu0 %v4746_v16, %s4870_s9 }
0x11c4   :  { %v4748_v17 = vpop.eup %4747 }
0x11c5   :  { %2357 = vrot.lane.b32.xlu1 %v4748_v17, %s4870_s9  ;;  %v4750_v21 = vpop.eup %4749 }
0x11c6   :  { %v2181_v22 = vadd.f32 1.0, %v4750_v21  ;;  %v4752_v23 = vpop.eup %4751 }
0x11c7   :  { %v2351_v24 = vadd.f32 1.0, %v4752_v23 }
0x11c8   :  { %4753 = vrcp.f32 %v2181_v22 }
0x11c9   :  { %4755 = vrcp.f32 %v2351_v24 }
0x11d2   :  { %v4754_v25 = vpop.eup %4753 }
0x11d3   :  { %v4756_v27 = vpop.eup %4755  ;;  %v2185_v30 = vmul.f32 %v4754_v25, %v5353_v47  ;;  %v4789_v47 = vld [vmem:[%s5701_s6] sm:$0xff] }
0x11d4   :  { %v2355_v34 = vmul.f32 %v4756_v27, %v5357_v50  ;;  %v2617_v48 = vrot.slane %v4789_v47, 7  ;;  %v2618_v50 = vrot.slane %v4790_v49, 6  ;;  %v2892_v49 = vld [vmem:[%s5667_s8] sm:$0xff] }
0x1233   :  { %v2188_v26 = vpop.permute.xlu0 %2187 }
0x1234   :  { %v2190_v18 = vmul.f32 %v4754_v25, %v2188_v26 }
0x1236   :  { %2192 = vrot.lane.b32.xlu0 %v2190_v18, %s4871_s1 }
0x1237   :  { %v2358_v28 = vpop.permute.xlu1 %2357 }
0x1238   :  { %v2360_v29 = vmul.f32 %v4756_v27, %v2358_v28 }
0x123a   :  { %2362 = vrot.lane.b32.xlu1 %v2360_v29, %s4871_s1 }
0x12a8   :  { %v2193_v31 = vpop.permute.xlu0 %2192 }
0x12a9   :  { %v5400_v33 = vadd.f32 %v2193_v31, %v2185_v30 }
0x12ab   :  { %4757 = vtanh.f32 %v5400_v33 }
0x12ac   :  { %v2363_v32 = vpop.permute.xlu1 %2362 }
0x12ad   :  { %v5404_v35 = vadd.f32 %v2363_v32, %v2355_v34  ;;  %v4792_v34 = vld [vmem:[%s5704_s27] ss:$0 sm:$0xff] }
0x12af   :  { %4759 = vtanh.f32 %v5404_v35 }
0x12b5   :  { %v4758_v37 = vpop.eup %4757 }
0x12b6   :  { %2198 = vrot.lane.b32.xlu0 %v4758_v37, %s4870_s9 }
0x12b9   :  { %v4760_v38 = vpop.eup %4759 }
0x12ba   :  { %2368 = vrot.lane.b32.xlu1 %v4760_v38, %s4870_s9 }
0x1328   :  { %v2199_v39 = vpop.permute.xlu0 %2198 }
0x1329   :  { %v2201_v41 = vmul.f32 %v4754_v25, %v2199_v39 }
0x132b   :  { %2373 = vrot.lane.b32.xlu0 %v2201_v41, %s4871_s1 }
0x132c   :  { %v2369_v42 = vpop.permute.xlu1 %2368 }
0x132d   :  { %v2371_v45 = vmul.f32 %v4756_v27, %v2369_v42 }
0x132f   :  { %2448 = vrot.lane.b32.xlu1 %v2371_v45, %s4871_s1 }
0x139d   :  { %v2374_v46 = vpop.permute.xlu0 %2373 }
0x139e   :  { %4285 = vmatmul.mubr.msk.f32.vlgmr.msra.gmra.mrb[28].mxu1 %vm119_vm3, %v2374_v46 }
0x139f   :  { %4585 = vmatpush3.bf16.msra.mxu1 %v5035_v6  ;;  %4306 = vmatprep.mubr.msk.f32.mxu1 %vm4868_vm0, %v4869_v2  ;;  %v2619_v6 = vsel %vm196_vm1, %v2618_v50, %v2617_v48  ;;  %v2893_v50 = vld [vmem:[%s5667_s8 + $0x8] sm:$0xff] }
0x13a0   :  { %4586 = vmatprep.subr.bf16.mxu1 %v4867_v1 }
0x13a1   :  { %v2449_v51 = vpop.permute.xlu1 %2448 }
0x13a2   :  { %4296 = vmatmul.mubr.msk.f32.vlgmr.msra.gmra.mrb[24].mxu0 %vm119_vm3, %v2449_v51 }
0x13a3   :  { %4588 = vmatpush3.bf16.msra.mxu1 %v5041_v8  ;;  %4591 = vmatpush3.bf16.msra.mxu0 %v5056_v12 }
0x13a4   :  { %4313 = vmatprep.mubr.msk.f32.mxu0 %vm4868_vm0, %v4869_v2  ;;  %4592 = vmatprep.subr.bf16.mxu0 %v4867_v1 }
0x13a5   :  { %4598 = vmatprep.subr.bf16.mxu1 %v4867_v1 }
0x13a6   :  { %4307 = vmatmul.mubr.msk.f32.vlgmr.msra.gmra.mrb[30].mxu1 %vm119_vm3, %v2449_v51  ;;  %4314 = vmatmul.mubr.msk.f32.vlgmr.msra.gmra.mrb[26].mxu0 %vm198_vm2, %v2619_v6  ;;  %v2896_v51 = vld [vmem:[%s5667_s8 + $0x20] sm:$0xf]  ;;  %v4605_v6 = vpack.c.bf16 %v2893_v50, %v2892_v49 }
0x13a7   :  { %4594 = vmatpush3.bf16.msra.mxu0 %v5092_v36  ;;  %4600 = vmatpush3.bf16.msra.mxu1 %v5103_v40  ;;  %v3818_v50 = vld [vmem:[%s5674_s15] ss:$0 sm:$0xff] }
0x13a8   :  { %4595 = vmatprep.subr.bf16.mxu0 %v4867_v1  ;;  %4324 = vmatprep.mubr.msk.f32.mxu0 %vm4868_vm0, %v4869_v2 }
0x13a9   :  { %4601 = vmatprep.subr.bf16.mxu1 %v4867_v1  ;;  %4335 = vmatprep.mubr.msk.f32.mxu1 %vm4868_vm0, %v4869_v2 }
0x13ab   :  { %4597 = vmatpush3.bf16.msra.mxu0 %v5112_v43  ;;  %4603 = vmatpush3.bf16.msra.mxu1 %v5116_v44  ;;  %v4791_v43 = vld [vmem:[#allocation3] ss:$0 sm:$0xff] }
0x13ac   :  { %4604 = vmatprep.subr.bf16.mxu1 %v4867_v1  ;;  %4338 = vmatprep.subr.mxu0 %v4869_v2 }
0x1471   :  { %v2443_v8 = vpop.f32.mrb[28].mxu1 }
0x1472   :  { %v4286_v12 = vpop.f32.mrb[29].mxu1 }
0x1473   :  { %v2895_v12 = vld [vmem:[%s5667_s8 + $0x18] sm:$0xff] }
0x1475   :  { %v2518_v36 = vpop.f32.mrb[24].mxu0 }
0x1476   :  { %v2519_v40 = vadd.f32 %v2518_v36, %v2443_v8  ;;  %v4297_v52 = vpop.f32.mrb[25].mxu0  ;;  %v2894_v8 = vld [vmem:[%s5667_s8 + $0x10] sm:$0xff] }
0x1477   :  { %v4608_v36 = vpack.c.bf16 %v2895_v12, %v2894_v8  ;;  %v5489_v52 = vld [vmem:[%s5705_s21] sm:$0x3] }
0x1478   :  { %v2522_v54 = vadd.f32 %v5157_v53, %v2519_v40 }
0x1479   :  { %v2613_v55 = vpop.f32.mrb[30].mxu1  ;;  %v2688_v56 = vpop.f32.mrb[26].mxu0 }
0x147a   :  { %4761 = vtanh.f32 %v2522_v54  ;;  %v4308_v57 = vpop.f32.mrb[31].mxu1  ;;  %v2689_v58 = vadd.f32 %v2688_v56, %v2613_v55  ;;  %v4315_v59 = vpop.f32.mrb[27].mxu0  ;;  %v3803_v62 = vmul.f32 -1.442695, %v2522_v54  ;;  %v3060_v54 = vld [vmem:[%s5669_s10] sm:$0xff]  ;;  %v3061_v55 = vld [vmem:[%s5669_s10 + $0x8] sm:$0xff] }
0x147b   :  { %v3062_v56 = vld [vmem:[%s5669_s10 + $0x10] sm:$0xff]  ;;  %v4611_v57 = vpack.c.bf16 %v3061_v55, %v3060_v54 }
0x147c   :  { %v2692_v60 = vadd.f32 %v4791_v43, %v2689_v58  ;;  %v3063_v58 = vld [vmem:[%s5669_s10 + $0x18] sm:$0xff] }
0x147d   :  { %v4614_v59 = vpack.c.bf16 %v3063_v58, %v3062_v56 }
0x147e   :  { %4763 = vtanh.f32 %v2692_v60  ;;  %v3806_v11 = vmul.f32 -1.442695, %v2692_v60 }
0x147f   :  { %4765 = vpow2.f32 %v3803_v62  ;;  %v3064_v62 = vld [vmem:[%s5669_s10 + $0x20] sm:$0xff] }
0x1480   :  { %4767 = vpow2.f32 %v3806_v11  ;;  %v3065_v11 = vld [vmem:[%s5669_s10 + $0x28] sm:$0xff] }
0x1484   :  { %v4762_v44 = vpop.eup %4761 }
0x1485   :  { %2532 = vrot.lane.b32.xlu0 %v4762_v44, %s4870_s9 }
0x1488   :  { %v4764_v61 = vpop.eup %4763 }
0x1489   :  { %2702 = vrot.lane.b32.xlu1 %v4764_v61, %s4870_s9  ;;  %v4766_v53 = vpop.eup %4765 }
0x148a   :  { %v2526_v14 = vadd.f32 1.0, %v4766_v53  ;;  %v4768_v63 = vpop.eup %4767 }
0x148b   :  { %v2696_v0 = vadd.f32 1.0, %v4768_v63  ;;  %v3066_v63 = vld [vmem:[%s5669_s10 + $0x30] sm:$0xff] }
0x148c   :  { %4769 = vrcp.f32 %v2526_v14  ;;  %v4617_v14 = vpack.c.bf16 %v3065_v11, %v3064_v62 }
0x148d   :  { %4771 = vrcp.f32 %v2696_v0  ;;  %v3067_v0 = vld [vmem:[%s5669_s10 + $0x38] sm:$0xff] }
0x1496   :  { %v4770_v3 = vpop.eup %4769 }
0x1497   :  { %v4772_v7 = vpop.eup %4771  ;;  %v2530_v13 = vmul.f32 %v4770_v3, %v5400_v33 }
0x1498   :  { %v2700_v17 = vmul.f32 %v4772_v7, %v5404_v35 }
0x14f7   :  { %v2533_v4 = vpop.permute.xlu0 %2532 }
0x14f8   :  { %v2535_v5 = vmul.f32 %v4770_v3, %v2533_v4 }
0x14fa   :  { %2537 = vrot.lane.b32.xlu0 %v2535_v5, %s4871_s1  ;;  %v3813_v5 = vld [vmem:[#allocation6] ss:$0 sm:$0xff] }
0x14fb   :  { %v2703_v9 = vpop.permute.xlu1 %2702 }
0x14fc   :  { %v2705_v10 = vmul.f32 %v4772_v7, %v2703_v9 }
0x14fe   :  { %2707 = vrot.lane.b32.xlu1 %v2705_v10, %s4871_s1 }
0x156c   :  { %v2538_v15 = vpop.permute.xlu0 %2537 }
0x156d   :  { %v2540_v16 = vadd.f32 %v2538_v15, %v2530_v13 }
0x156f   :  { %4773 = vtanh.f32 %v2540_v16 }
0x1570   :  { %v2708_v19 = vpop.permute.xlu1 %2707 }
0x1571   :  { %v2710_v20 = vadd.f32 %v2708_v19, %v2700_v17  ;;  %v3152_v17 = vld [vmem:[%s5671_s12 + $0x8] sm:$0xff] }
0x1573   :  { %4775 = vtanh.f32 %v2710_v20  ;;  %v3153_v20 = vld [vmem:[%s5671_s12 + $0x10] sm:$0xff] }
0x1579   :  { %v4774_v21 = vpop.eup %4773 }
0x157a   :  { %2543 = vrot.lane.b32.xlu0 %v4774_v21, %s4870_s9  ;;  %v3154_v21 = vld [vmem:[%s5671_s12 + $0x18] sm:$0xff] }
0x157d   :  { %v4776_v22 = vpop.eup %4775 }
0x157e   :  { %2713 = vrot.lane.b32.xlu1 %v4776_v22, %s4870_s9  ;;  %v4626_v22 = vpack.c.bf16 %v3154_v21, %v3153_v20  ;;  %v3826_v20 = vld [vmem:[%s5678_s19] ss:$0 sm:$0xff] }
0x15ec   :  { %v2544_v23 = vpop.permute.xlu0 %2543 }
0x15ed   :  { %v2546_v24 = vmul.f32 %v4770_v3, %v2544_v23  ;;  %v4620_v3 = vpack.c.bf16 %v3067_v0, %v3066_v63  ;;  %v3814_v23 = vld [vmem:[%s5670_s11] ss:$0 sm:$0xff] }
0x15ee   :  { %v3572_v0 = vld [vmem:[%s5677_s18 + $0x20] sm:$0xff] }
0x15ef   :  { %2718 = vrot.lane.b32.xlu0 %v2546_v24, %s4871_s1 }
0x15f0   :  { %v2714_v25 = vpop.permute.xlu1 %2713 }
0x15f1   :  { %v2716_v26 = vmul.f32 %v4772_v7, %v2714_v25 }
0x15f3   :  { %2793 = vrot.lane.b32.xlu1 %v2716_v26, %s4871_s1 }
0x1661   :  { %v2719_v18 = vpop.permute.xlu0 %2718 }
0x1662   :  { %4325 = vmatmul.mubr.msk.f32.vlgmr.msra.gmra.mrb[28].mxu0 %vm119_vm3, %v2719_v18 }
0x1663   :  { %4340 = vmatprep.mubr.msk.f32.mxu0 %vm4868_vm0, %v4869_v2  ;;  %4339 = vmatpush3.msk.msra.mxu0 %vm2901_vm4, %v2896_v51 }
0x1664   :  { %4610 = vmatprep.subr.bf16.mxu0 %v4867_v1 }
0x1665   :  { %v2794_v27 = vpop.permute.xlu1 %2793 }
0x1666   :  { %4336 = vmatmul.mubr.msk.f32.vlgmr.msra.gmra.mrb[32].mxu1 %vm119_vm3, %v2794_v27  ;;  %4341 = vmatmul.mubr.msk.f32.vlgmr.msra.gmra.mrb[30].mxu0 %vm2897_vm5, %v5489_v52 }
0x1667   :  { %4351 = vmatprep.mubr.msk.f32.mxu1 %vm4868_vm0, %v4869_v2  ;;  %4606 = vmatpush3.bf16.msra.mxu1 %v4605_v6 }
0x1668   :  { %4607 = vmatprep.subr.bf16.mxu1 %v4867_v1  ;;  %4370 = vmatprep.mubr.msk.f32.mxu0 %vm4868_vm0, %v4869_v2 }
0x1669   :  { %4612 = vmatpush3.bf16.msra.mxu0 %v4611_v57 }
0x166a   :  { %4613 = vmatprep.subr.bf16.mxu0 %v4867_v1 }
0x166b   :  { %4609 = vmatpush3.bf16.msra.mxu1 %v4608_v36 }
0x166c   :  { %4622 = vmatprep.subr.bf16.mxu1 %v4867_v1 }
0x166d   :  { %4615 = vmatpush3.bf16.msra.mxu0 %v4614_v59  ;;  %v3480_v59 = vld [vmem:[%s5675_s16 + $0x24] sm:$0xf] }
0x166e   :  { %4616 = vmatprep.subr.bf16.mxu0 %v4867_v1 }
0x1671   :  { %4618 = vmatpush3.bf16.msra.mxu0 %v4617_v14  ;;  %v3571_v14 = vld [vmem:[%s5677_s18 + $0x18] sm:$0xff] }
0x1672   :  { %4619 = vmatprep.subr.bf16.mxu0 %v4867_v1 }
0x1675   :  { %4621 = vmatpush3.bf16.msra.mxu0 %v4620_v3  ;;  %v3573_v3 = vld [vmem:[%s5677_s18 + $0x28] sm:$0xff] }
0x1676   :  { %4391 = vmatprep.subr.mxu0 %v4869_v2 }
0x1735   :  { %v2788_v28 = vpop.f32.mrb[28].mxu0 }
0x1736   :  { %v4326_v29 = vpop.f32.mrb[29].mxu0 }
0x1737   :  { %v3238_v29 = vld [vmem:[%s5673_s14 + $0x8] sm:$0xff] }
0x1739   :  { %v2863_v30 = vpop.f32.mrb[32].mxu1  ;;  %v2971_v61 = vpop.f32.mrb[30].mxu0 }
0x173a   :  { %v2864_v31 = vadd.f32 %v2863_v30, %v2788_v28  ;;  %v4337_v33 = vpop.f32.mrb[33].mxu1  ;;  %v4342_v53 = vpop.f32.mrb[31].mxu0  ;;  %v3237_v28 = vld [vmem:[%s5673_s14] sm:$0xff] }
0x173b   :  { %v4629_v30 = vpack.c.bf16 %v3238_v29, %v3237_v28  ;;  %v3816_v33 = vld [vmem:[%s5672_s13] ss:$0 sm:$0xff]  ;;  %v3570_v53 = vld [vmem:[%s5677_s18 + $0x10] sm:$0xff] }
0x173c   :  { %v2867_v32 = vadd.f32 %v4792_v34, %v2864_v31  ;;  %v3336_v31 = vld [vmem:[%s5675_s16 + $0x20] sm:$0xf]  ;;  %v4641_v63 = vpack.c.bf16 %v3571_v14, %v3570_v53 }
0x173e   :  { %4777 = vtanh.f32 %v2867_v32  ;;  %v3809_v37 = vmul.f32 -1.442695, %v2867_v32 }
0x1740   :  { %4779 = vpow2.f32 %v3809_v37  ;;  %v3332_v37 = vld [vmem:[%s5675_s16] sm:$0xff] }
0x1748   :  { %v4778_v35 = vpop.eup %4777 }
0x1749   :  { %2877 = vrot.lane.b32.xlu0 %v4778_v35, %s4870_s9 }
0x174a   :  { %v4780_v38 = vpop.eup %4779 }
0x174b   :  { %v2871_v39 = vadd.f32 1.0, %v4780_v38  ;;  %v3333_v38 = vld [vmem:[%s5675_s16 + $0x8] sm:$0xff] }
0x174d   :  { %4781 = vrcp.f32 %v2871_v39 }
0x1757   :  { %v4782_v41 = vpop.eup %4781 }
0x1758   :  { %v2875_v46 = vmul.f32 %v4782_v41, %v2540_v16  ;;  %v3151_v16 = vld [vmem:[%s5671_s12] sm:$0xff] }
0x1759   :  { %v4623_v19 = vpack.c.bf16 %v3152_v17, %v3151_v16 }
0x17bb   :  { %v2878_v42 = vpop.permute.xlu0 %2877 }
0x17bc   :  { %v2880_v45 = vmul.f32 %v4782_v41, %v2878_v42 }
0x17be   :  { %2882 = vrot.lane.b32.xlu1 %v2880_v45, %s4871_s1  ;;  %v3334_v45 = vld [vmem:[%s5675_s16 + $0x10] sm:$0xff] }
0x1830   :  { %v2883_v47 = vpop.permute.xlu1 %2882 }
0x1831   :  { %v2885_v48 = vadd.f32 %v2883_v47, %v2875_v46  ;;  %v3335_v46 = vld [vmem:[%s5675_s16 + $0x18] sm:$0xff] }
0x1832   :  { %v4635_v47 = vpack.c.bf16 %v3335_v46, %v3334_v45 }
0x1833   :  { %4783 = vtanh.f32 %v2885_v48 }
0x183d   :  { %v4784_v40 = vpop.eup %4783 }
0x183e   :  { %2888 = vrot.lane.b32.xlu0 %v4784_v40, %s4870_s9 }
0x18b0   :  { %v2889_v43 = vpop.permute.xlu0 %2888 }
0x18b1   :  { %v2891_v60 = vmul.f32 %v4782_v41, %v2889_v43  ;;  %v4632_v41 = vpack.c.bf16 %v3333_v38, %v3332_v37 }
0x18b3   :  { %2976 = vrot.lane.b32.xlu1 %v2891_v60, %s4871_s1  ;;  %v3568_v60 = vld [vmem:[%s5677_s18] sm:$0xff] }
0x1925   :  { %v5510_v44 = vpop.permute.xlu1 %2976 }
0x1926   :  { %4352 = vmatmul.mubr.msk.f32.vlgmr.msra.gmra.mrb[34].mxu1 %vm119_vm3, %v5510_v44 }
0x1927   :  { %4381 = vmatprep.mubr.msk.f32.mxu1 %vm4868_vm0, %v4869_v2  ;;  %4624 = vmatpush3.bf16.msra.mxu1 %v4623_v19  ;;  %v3658_v19 = vld [vmem:[%s5679_s20] sm:$0xff] }
0x1928   :  { %4625 = vmatprep.subr.bf16.mxu1 %v4867_v1 }
0x192b   :  { %4627 = vmatpush3.bf16.msra.mxu1 %v4626_v22 }
0x192c   :  { %4628 = vmatprep.subr.bf16.mxu1 %v4867_v1 }
0x19f9   :  { %v3046_v4 = vpop.f32.mrb[34].mxu1 }
0x19fa   :  { %v3047_v7 = vadd.f32 %v3046_v4, %v2971_v61  ;;  %v4353_v9 = vpop.f32.mrb[35].mxu1  ;;  %v4644_v4 = vpack.c.bf16 %v3573_v3, %v3572_v0 }
0x19fc   :  { %v3057_v10 = vadd.f32 %v3813_v5, %v3047_v7  ;;  %v3575_v5 = vld [vmem:[%s5677_s18 + $0x38] sm:$0xff] }
0x19fe   :  { %v3058_v13 = vmul.f32 0.01, %v3057_v10 }
0x1a00   :  { %v3059_v15 = vmax.f32 %v3057_v10, %v3058_v13  ;;  %v3825_v10 = vld [vmem:[%s5676_s17] ss:$0 sm:$0xff]  ;;  %s4872_s17 = smov [#allocation8]  }
0x1a01   :  { %s3748_s8 = sshll.u32 %s4872_s17, 4  ;;  %s3749_s8 = int_to_ptr.vmem [resolvable:$true] %s3748_s8 }
0x1a02   :  { %4371 = vmatmul.mubr.msk.f32.vlgmr.msra.gmra.mrb[32].mxu0 %vm3075_vm6, %v3059_v15  ;;  %s4837_s6 = scalar_lea.vmem %s3749_s8, 32  ;;  %p4842_p3 = scmp.lt.s32.totalorder %s3749_s8, %s3749_s8 }
0x1a03   :  { %4393 = vmatprep.mubr.msk.f32.mxu0 %vm4868_vm0, %v4869_v2  ;;  %4392 = vmatpush3.msk.msra.mxu0 %vm2901_vm4, %v3336_v31  ;;  %p4838_p2 = scmp.ne.s32.totalorder %s3749_s8, %s4837_s6  ;;  %p4843_p4 = scmp.lt.s32.totalorder %s4837_s6, %s4837_s6 }
0x1a04   :  { %4407 = vmatprep.subr.mxu0 %v4869_v2 }
0x1a05   :  { %p4844_p5 = por %p4843_p4, %p4842_p3 }
0x1a06   :  { %4394 = vmatmul.mubr.msk.f32.vlgmr.msra.gmra.mrb[34].mxu0 %vm2897_vm5, %v5489_v52 }
0x1a07   :  { %4409 = vmatprep.mubr.msk.f32.mxu0 %vm4868_vm0, %v4869_v2  ;;  %4408 = vmatpush3.msk.msra.mxu0 %vm2901_vm4, %v3480_v59  ;;  %p4845_p6 = pnand %p4844_p5, %p4838_p2 }
0x1a08   :  { %4637 = vmatprep.subr.bf16.mxu0 %v4867_v1 }
0x1ad5   :  { %v3145_v24 = vpop.f32.mrb[32].mxu0 }
0x1ad6   :  { %v3146_v25 = vadd.f32 %v3814_v23, %v3145_v24  ;;  %v4372_v26 = vpop.f32.mrb[33].mxu0 }
0x1ad8   :  { %v3149_v18 = vmul.f32 0.01, %v3146_v25 }
0x1ad9   :  { %v3406_v48 = vpop.f32.mrb[34].mxu0 }
0x1ada   :  { %v3150_v27 = vmax.f32 %v3146_v25, %v3149_v18  ;;  %v4395_v49 = vpop.f32.mrb[35].mxu0 }
0x1adc   :  { %4382 = vmatmul.mubr.msk.f32.vlgmr.msra.gmra.mrb[36].mxu1 %vm119_vm3, %v3150_v27 }
0x1add   :  { %4388 = vmatprep.mubr.msk.f32.mxu1 %vm4868_vm0, %v4869_v2  ;;  %4630 = vmatpush3.bf16.msra.mxu1 %v4629_v30 }
0x1ade   :  { %4631 = vmatprep.subr.bf16.mxu1 %v4867_v1 }
0x1baf   :  { %v3231_v34 = vpop.f32.mrb[36].mxu1 }
0x1bb0   :  { %v3232_v32 = vadd.f32 %v3816_v33, %v3231_v34  ;;  %v4383_v35 = vpop.f32.mrb[37].mxu1 }
0x1bb2   :  { %v3235_v39 = vmul.f32 0.01, %v3232_v32 }
0x1bb4   :  { %v3236_v42 = vmax.f32 %v3232_v32, %v3235_v39 }
0x1bb6   :  { %4389 = vmatmul.mubr.msk.f32.vlgmr.msra.gmra.mrb[38].mxu1 %vm198_vm2, %v3236_v42 }
0x1bb7   :  { %4633 = vmatpush3.bf16.msra.mxu1 %v4632_v41  ;;  %4404 = vmatprep.mubr.msk.f32.mxu1 %vm4868_vm0, %v4869_v2 }
0x1bb8   :  { %4634 = vmatprep.subr.bf16.mxu1 %v4867_v1 }
0x1bbb   :  { %4636 = vmatpush3.bf16.msra.mxu1 %v4635_v47 }
0x1bbc   :  { %4431 = vmatprep.subr.mxu1 %v4869_v2 }
0x1bbe   :  { %4405 = vmatmul.mubr.msk.f32.vlgmr.msra.gmra.mrb[40].mxu1 %vm119_vm3, %v5510_v44  ;;  %v3569_v44 = vld [vmem:[%s5677_s18 + $0x8] sm:$0xff] }
0x1bbf   :  { %4433 = vmatprep.mubr.msk.f32.mxu1 %vm4868_vm0, %v4869_v2  ;;  %v4638_v62 = vpack.c.bf16 %v3569_v44, %v3568_v60  ;;  %4432 = vmatpush3.msra.mxu1 %v3658_v19 }
0x1c89   :  { %v3315_v51 = vpop.f32.mrb[38].mxu1 }
0x1c8a   :  { %v3316_v6 = vadd.f32 %v3818_v50, %v3315_v51  ;;  %v4390_v8 = vpop.f32.mrb[39].mxu1 }
0x1c8c   :  { %v3320_v12 = vsel %vm3319_vm7, %v3316_v6, -inf }
0x1c8d   :  { %3321 = vmax.xlane.f32.xlu0 %v3320_v12 }
0x1c91   :  { %v3476_v36 = vpop.f32.mrb[40].mxu1 }
0x1c92   :  { %v3477_v40 = vadd.f32 %v3476_v36, %v3406_v48  ;;  %v4406_v52 = vpop.f32.mrb[41].mxu1 }
0x1d1a   :  { %v3322_v54 = vpop.xlane.xlu0 %3321 }
0x1d1b   :  { %v3323_v55 = vsub.f32 %v3316_v6, %v3322_v54 }
0x1d1d   :  { %v3324_v56 = vmul.f32 1.442695, %v3323_v55 }
0x1d1f   :  { %4785 = vpow2.f32 %v3324_v56 }
0x1d29   :  { %v4786_v57 = vpop.eup %4785 }
0x1d2a   :  { %v3326_v58 = vsel %vm3319_vm7, %v4786_v57, 0.0 }
0x1d2b   :  { %3327 = vadd.xlane.f32.xlu1 %v3326_v58 }
0x1db8   :  { %v3328_v43 = vpop.xlane.xlu1 %3327 }
0x1db9   :  { %4787 = vrcp.f32 %v3328_v43 }
0x1dc3   :  { %v4788_v61 = vpop.eup %4787 }
0x1dc4   :  { %v3330_v11 = vmul.f32 %v4788_v61, %v4786_v57 }
0x1dc6   :  { %3331 = vst.msk [vmem:[#allocation8] sm:$0x3] %vm3319_vm7, %v3330_v11  ;;  %4410 = vmatmul.mubr.msk.f32.vlgmr.msra.gmra.mrb[36].mxu0 %vm2897_vm5, %v3330_v11 }
0x1dc7   :  { %4639 = vmatpush3.bf16.msra.mxu0 %v4638_v62  ;;  %4428 = vmatprep.mubr.msk.f32.mxu0 %vm4868_vm0, %v4869_v2  ;;  %v3574_v2 = vld [vmem:[%s5677_s18 + $0x30] sm:$0xff] }
0x1dc8   :  { %4640 = vmatprep.subr.bf16.mxu0 %v4867_v1  ;;  %v4647_v7 = vpack.c.bf16 %v3575_v5, %v3574_v2 }
0x1dcb   :  { %4642 = vmatpush3.bf16.msra.mxu0 %v4641_v63 }
0x1dcc   :  { %4643 = vmatprep.subr.bf16.mxu0 %v4867_v1 }
0x1dcf   :  { %4645 = vmatpush3.bf16.msra.mxu0 %v4644_v4 }
0x1dd0   :  { %4646 = vmatprep.subr.bf16.mxu0 %v4867_v1 }
0x1dd3   :  { %4648 = vmatpush3.bf16.msra.mxu0 %v4647_v7 }
0x1e99   :  { %v3553_v9 = vpop.f32.mrb[36].mxu0 }
0x1e9a   :  { %v3557_v13 = vadd.f32 %v3553_v9, %v3477_v40  ;;  %v4411_v15 = vpop.f32.mrb[37].mxu0 }
0x1e9c   :  { %v3565_v16 = vadd.f32 %v3825_v10, %v3557_v13 }
0x1e9e   :  { %v3566_v17 = vmul.f32 0.01, %v3565_v16 }
0x1ea0   :  { %v3567_v1 = vmax.f32 %v3565_v16, %v3566_v17 }
0x1ea2   :  { %4429 = vmatmul.mubr.msk.f32.vlgmr.msra.gmra.mrb[38].mxu0 %vm3075_vm6, %v3567_v1 }
0x1f75   :  { %v3652_v21 = vpop.f32.mrb[38].mxu0 }
0x1f76   :  { %v3653_v22 = vadd.f32 %v3826_v20, %v3652_v21  ;;  %v4430_v23 = vpop.f32.mrb[39].mxu0 }
0x1f78   :  { %v3656_v24 = vmul.f32 0.01, %v3653_v22 }
0x1f7a   :  { %v3657_v25 = vmax.f32 %v3653_v22, %v3656_v24 }
0x1f7c   :  { %4434 = vmatmul.mubr.msk.f32.vlgmr.msra.gmra.mrb[42].mxu1 %vm3666_vm8, %v3657_v25 }
0x1f7d   :  { %4848 = shalt.err (!%p4845_p6)
}
0x1f7e   :  { %s4849_s19 = scalar_lea.hbm %s5681_s22, 32 }
0x1f7f   :  { %p4850_p7 = scmp.ne.s32.totalorder %s5681_s22, %s4849_s19  ;;  %p4853_p8 = scmp.lt.u32.totalorder %s4849_s19, %s5681_s22 }
0x1f81   :  { %p4855_p9 = pnand %p4853_p8, %p4850_p7 }
0x1f83   :  { %4858 = shalt.err (!%p4855_p9)
}
0x1f84   :  { %3751 = dma.vmem_to_hbm [thread:$0]  %s3749_s8, 32, %s5681_s22, [#allocation5]   ;;  %v3828_v26 = vld [vmem:[#allocation2] ss:$0 sm:$0xff]  ;;  %vm3740_vm9 = vcmask 1024  }
0x204f   :  { %v3736_v18 = vpop.f32.mrb[42].mxu1 }
0x2050   :  { %v3737_v27 = vadd.f32 %v3828_v26, %v3736_v18  ;;  %v4435_v28 = vpop.f32.mrb[43].mxu1 }
0x2052   :  { %3741 = vst.msk [vmem:[%s5682_s23] sm:$0x3] %vm3740_vm9, %v3737_v27 }
0x2053   :  { %4863 = dma.done.wait [#allocation5], 32  }
0x2054   :  { %4864 = vsyncadd [#allocation5], 4294967264 }
0x2055   :  { %3759 = vsyncpa [#allocation4], 1 }
0x2056   :  { %3760 = vsyncpa [#allocation7], 1 }
0x2057   :  { %3761 = vsyncpa [#allocation5], 1 }

</bundles_post_ra>
